<compile_context>
chip_gen: v5e
topology: v5e:2x2
jax: 0.10.0
libtpu: 0.0.40
codegen_flags: <defaults>
</compile_context>

<pallas_src>
import functools

import jax
import jax.numpy as jnp
from jax.experimental import pallas as pl
from jax.experimental.pallas import tpu as pltpu  # noqa: F401  (TPU backend assumed)

# ----------------------------- configuration ------------------------------
N = 2            # batch
L = 8            # aspects per example
E = 32           # aspect_emb_size; aspect_merge='add' -> aspect_dim_size == E
H = 4            # num_heads
HD = E // H      # head dim
FF = 128         # TransformerEncoderLayer dim_feedforward (hard-coded 128)
NL = 2           # trans_layer_num
OUT = 32         # last_out_dim (== ui_feature dim)
N_TYPES = 4      # aspect_type_embedding rows
ROWS = N * L     # batch folded along the sublane axis
LANES = 128      # lane-dense slab width

NEG_BIG = -1e30  # additive key-padding bias inside the transformer
LN_EPS = 1e-5
SCALE = 1.0 / (HD ** 0.5)

# lane layout of the packed activation slab (ROWS, 128)
REP_OFF = 0                 # lanes   0:32   ent_aspect_rep (ROWS, E)
UIF_OFF = E                 # lanes  32:64   ui_feature     (rows 0..N-1)
KEYB_OFF = 2 * E            # lanes  64:80   key-padding bias (ROWS, ROWS)
FMASK_OFF = 2 * E + ROWS    # lanes  80:96   final-attn mask  (rows 0..N-1)
IDS_OFF = FMASK_OFF + ROWS  # lane   96      aspect type id (float)
W_OFF = IDS_OFF + 1         # lane   97      aspect weight
ACT_USED = W_OFF + 1        # 98 lanes used; rest zero


# ------------------------------- the kernel -------------------------------
def aspect_encode_kernel(act_ref, p32_ref, p128_ref, out_ref, *, off32, off128):
    f32 = jnp.float32

    def row32(name):                       # one (1, E) parameter row
        o = off32[name]
        return p32_ref[o:o + 1, :]

    act = act_ref[...]                                   # (ROWS, 128) one slab
    rep = act[:, REP_OFF:REP_OFF + E]                    # (ROWS, E)
    uif = act[0:N, UIF_OFF:UIF_OFF + OUT]                # (N, OUT)
    keyb = act[:, KEYB_OFF:KEYB_OFF + ROWS]              # (ROWS, ROWS)
    fmask = act[0:N, FMASK_OFF:FMASK_OFF + ROWS]         # (N, ROWS)
    ids = act[:, IDS_OFF:IDS_OFF + 1]                    # (ROWS, 1) float ids
    w = act[:, W_OFF:W_OFF + 1]                          # (ROWS, 1) aspect weight

    # --- aspect-type embedding: 4-way VPU select (no MXU on the critical path)
    emb = p32_ref[off32["emb"]:off32["emb"] + 8, :]      # rows 0..3 valid
    type_feat = jnp.zeros((ROWS, E), f32)
    for t in range(N_TYPES):
        type_feat = type_feat + jnp.where(ids == jnp.float32(t), emb[t:t + 1, :], 0.0)

    # --- aspect_merge == 'add', then aspect-weight scaling ---
    x = (type_feat + rep) * w                            # (ROWS, E)

    def layer_norm(v, g, b):
        mu = jnp.mean(v, axis=-1, keepdims=True)
        var = jnp.mean((v - mu) ** 2, axis=-1, keepdims=True)
        return (v - mu) * jax.lax.rsqrt(var + LN_EPS) * g + b

    # --- nn.TransformerEncoder (post-norm, relu, eval-mode dropout) ---------
    # NL=2 / H=4 kept as fully-unrolled static Python loops (LLO visibility).
    for l in range(NL):
        # Fused QKV projection: one MXU push, (ROWS, 128) result,
        # lanes [0:32]=Q, [32:64]=K, [64:96]=V, [96:128]=zero padding.
        oq = off128[f"qkv{l}"]
        qkvw = p128_ref[oq:oq + E, :]                    # (E, 128)
        qkvb = p128_ref[oq + E:oq + E + 1, :]            # (1, 128)
        qkv = jnp.dot(x, qkvw, preferred_element_type=f32) + qkvb   # (ROWS, 128)

        head_outs = []
        for h in range(H):
            qh = qkv[:, h * HD:(h + 1) * HD] * SCALE                 # (ROWS, HD)
            kh = qkv[:, E + h * HD:E + (h + 1) * HD]
            vh = qkv[:, 2 * E + h * HD:2 * E + (h + 1) * HD]

            # qh @ kh.T without materializing a transpose
            s = jax.lax.dot_general(qh, kh, (((1,), (1,)), ((), ())),
                                    preferred_element_type=f32)      # (ROWS, ROWS)
            s = s + keyb
            s = s - jnp.max(s, axis=-1, keepdims=True)
            p = jnp.exp(s)
            # exact reciprocal; approx=True would risk the 1e-4 tolerance.
            p = p * pl.reciprocal(jnp.sum(p, axis=-1, keepdims=True), approx=False)
            head_outs.append(jnp.dot(p, vh, preferred_element_type=f32))  # (ROWS, HD)

        # Fused out-projection: concat heads along lanes (matches PyTorch
        # multihead concat order), one (ROWS,E)@(E,E) matmul.
        concat_ho = jnp.concatenate(head_outs, axis=-1)              # (ROWS, E)
        owt_off = off32[f"owt{l}"]
        attn_out = jnp.dot(concat_ho, p32_ref[owt_off:owt_off + E, :],
                           preferred_element_type=f32) + row32(f"ob{l}")

        x = layer_norm(x + attn_out, row32(f"ln1w{l}"), row32(f"ln1b{l}"))

        o1 = off128[f"l1{l}"]
        hid = jnp.dot(x, p128_ref[o1:o1 + E, :], preferred_element_type=f32) \
            + p128_ref[o1 + E:o1 + E + 1, :]                         # (ROWS, FF)
        hid = jnp.maximum(hid, 0.0)
        o2 = off32[f"l2wt{l}"]
        ff = jnp.dot(hid, p32_ref[o2:o2 + FF, :], preferred_element_type=f32) \
            + row32(f"l2b{l}")                                       # (ROWS, E)

        x = layer_norm(x + ff, row32(f"ln2w{l}"), row32(f"ln2b{l}"))

    # --- dropout (identity in eval) + asp_fc --------------------------------
    ofc = off32["fcwt"]
    keys = jnp.dot(x, p32_ref[ofc:ofc + E, :], preferred_element_type=f32) + row32("fcb")

    # --- Attention(ui_query, keys, keys, mask), batch folded ----------------
    energy = jax.lax.dot_general(uif, keys, (((1,), (1,)), ((), ())),
                                 preferred_element_type=f32)         # (N, ROWS)
    energy = jnp.where(fmask == 0.0, -1e20, energy)                  # exact module constant
    energy = energy - jnp.max(energy, axis=-1, keepdims=True)
    pr = jnp.exp(energy)
    attn = pr * pl.reciprocal(jnp.sum(pr, axis=-1, keepdims=True), approx=False)
    outv = jnp.tanh(jnp.dot(attn, keys, preferred_element_type=f32))  # (N, OUT)

    # single 128-lane-wide output slab -> unmasked vst
    out_ref[...] = jnp.concatenate(
        [outv, attn, jnp.zeros((N, LANES - OUT - ROWS), f32)], axis=-1)


# -------------------------- parameter coalescing ---------------------------
def pack_params(params):
    """Coalesce the 15 parameter tensors into 2 contiguous f32 buffers."""
    f32 = jnp.float32

    # ---- 128-lane slab: per layer [QKV weight+bias] and [linear1 weight+bias]
    rows128, off128 = [], {}
    cur = 0

    def add128(name, arr):
        nonlocal cur
        arr = arr.astype(f32)
        r, c = arr.shape
        if c < LANES:
            arr = jnp.concatenate([arr, jnp.zeros((r, LANES - c), f32)], axis=-1)
        off128[name] = cur
        rows128.append(arr)
        pad = (-r) % 8                                  # 8-row aligned segments
        if pad:
            rows128.append(jnp.zeros((pad, LANES), f32))
        cur += r + pad

    for l in range(NL):
        # (E, 3E) weight with columns [q | k | v], plus bias row -> (E+1, 96)
        add128(f"qkv{l}", jnp.concatenate([params["inwt"][l], params["inb"][l]], axis=0))
        # (E, FF) weight plus bias row -> (E+1, 128)
        add128(f"l1{l}", jnp.concatenate([params["l1wt"][l], params["l1b"][l]], axis=0))
    p128 = jnp.concatenate(rows128, axis=0)

    # ---- 32-lane slab: everything whose lane width is E / OUT
    rows32, off32 = [], {}
    cur = 0

    def add32(name, arr):
        nonlocal cur
        arr = arr.astype(f32)
        off32[name] = cur
        rows32.append(arr)
        pad = (-arr.shape[0]) % 8
        if pad:
            rows32.append(jnp.zeros((pad, arr.shape[1]), f32))
        cur += arr.shape[0] + pad

    add32("emb", params["emb"])                    # (4, E)
    for l in range(NL):
        add32(f"owt{l}", params["owt"][l])         # (E, E)
        add32(f"ob{l}", params["ob"][l])           # (1, E)
        add32(f"ln1w{l}", params["ln1w"][l])
        add32(f"ln1b{l}", params["ln1b"][l])
        add32(f"l2wt{l}", params["l2wt"][l])       # (FF, E)
        add32(f"l2b{l}", params["l2b"][l])
        add32(f"ln2w{l}", params["ln2w"][l])
        add32(f"ln2b{l}", params["ln2b"][l])
    add32("fcwt", params["fcwt"])                  # (E, OUT)
    add32("fcb", params["fcb"])                    # (1, OUT)
    p32 = jnp.concatenate(rows32, axis=0)

    return p32, p128, off32, off128


# ------------------------------ the wrapper --------------------------------
def aspect_encode(aspect_ids, masks, weights, ui_feature, ent_aspect_rep, params):
    f32 = jnp.float32
    p32, p128, off32, off128 = pack_params(params)

    rep = ent_aspect_rep.astype(f32).reshape(ROWS, E)
    ids = aspect_ids[:, 1, :].astype(f32).reshape(ROWS, 1)
    w = weights.astype(f32).reshape(ROWS, 1)

    # Block-diagonal key-padding bias: a query row in batch b may only attend
    # to un-padded keys of the same batch.
    m = masks.astype(f32).reshape(ROWS)
    rb = jnp.arange(ROWS) // L
    same = rb[:, None] == rb[None, :]
    keyb = jnp.where(same & (m[None, :] > 0.0), 0.0, NEG_BIG).astype(f32)    # (ROWS, ROWS)

    # Final-attention validity mask (1 = same batch and not padded).
    fmask = ((jnp.arange(N)[:, None] == rb[None, :]) & (m[None, :] > 0.0)).astype(f32)

    # One lane-dense (ROWS, 128) activation slab: one input DMA.
    uif_p = jnp.concatenate([ui_feature.astype(f32),
                             jnp.zeros((ROWS - N, OUT), f32)], axis=0)
    fmask_p = jnp.concatenate([fmask, jnp.zeros((ROWS - N, ROWS), f32)], axis=0)
    act = jnp.concatenate(
        [rep, uif_p, keyb, fmask_p, ids, w,
         jnp.zeros((ROWS, LANES - ACT_USED), f32)], axis=-1)                 # (ROWS, 128)

    inputs = [act, p32, p128]

    def vspec(shape):
        zeros = (0,) * len(shape)
        return pl.BlockSpec(shape, lambda zeros=zeros: zeros)

    # Single invocation (no grid): the whole problem is ~µs scale, so one
    # kernel step beats grid stepping.  (For larger batches, fold more
    # sequences into ROWS; on v7x a leading "parallel" grid axis would then
    # let the second TensorCore help.)
    packed = pl.pallas_call(
        functools.partial(aspect_encode_kernel, off32=off32, off128=off128),
        out_shape=jax.ShapeDtypeStruct((N, LANES), f32),
        in_specs=[vspec(x.shape) for x in inputs],
        out_specs=vspec((N, LANES)),
    )(*inputs)

    out = packed[:, :OUT]                                                    # (N, OUT)
    attn = packed[:, OUT:OUT + ROWS].reshape(N, N, L)[jnp.arange(N), jnp.arange(N)]  # (N, L)
    return out, attn


# -------------------------- pure-JAX reference -----------------------------
def reference(aspect_ids, masks, weights, ui_feature, ent_aspect_rep, params):
    at = aspect_ids[:, 1, :]
    type_feat = params["emb"][at]                                # (N, L, E)
    x = (type_feat + ent_aspect_rep) * weights[:, :, None]
    key_bias = jnp.where(masks == 0.0, NEG_BIG, 0.0)[:, None, None, :]  # (N,1,1,L)

    def ln(x, g, b):
        mu = jnp.mean(x, axis=-1, keepdims=True)
        var = jnp.mean((x - mu) ** 2, axis=-1, keepdims=True)
        return (x - mu) * jax.lax.rsqrt(var + LN_EPS) * g + b

    for l in range(NL):
        qkv = x @ params["inwt"][l] + params["inb"][l][0]
        q, k, v = qkv[..., :E], qkv[..., E:2 * E], qkv[..., 2 * E:]
        sh = lambda t: t.reshape(N, L, H, HD).transpose(0, 2, 1, 3)
        qh, kh, vh = sh(q) * SCALE, sh(k), sh(v)
        s = jnp.einsum("nhqd,nhkd->nhqk", qh, kh) + key_bias
        p = jax.nn.softmax(s, axis=-1)
        o = jnp.einsum("nhqk,nhkd->nhqd", p, vh).transpose(0, 2, 1, 3).reshape(N, L, E)
        o = o @ params["owt"][l] + params["ob"][l][0]
        x = ln(x + o, params["ln1w"][l][0], params["ln1b"][l][0])
        ff = jax.nn.relu(x @ params["l1wt"][l] + params["l1b"][l][0])
        ff = ff @ params["l2wt"][l] + params["l2b"][l][0]
        x = ln(x + ff, params["ln2w"][l][0], params["ln2b"][l][0])

    keys_ = x @ params["fcwt"] + params["fcb"][0]
    energy = jnp.einsum("ne,nle->nl", ui_feature, keys_)
    energy = jnp.where(masks == 0.0, -1e20, energy)
    attn = jax.nn.softmax(energy, axis=-1)
    out = jnp.tanh(jnp.einsum("nl,nle->ne", attn, keys_))
    return out, attn


# --------------------------------- main -------------------------------------
if __name__ == "__main__":
    root = jax.random.PRNGKey(0)
    ks = jax.random.split(root, 32)

    def u(k, shape, a=0.1):
        return jax.random.uniform(k, shape, jnp.float32, -a, a)

    # Parameters (deterministic synthetic init; reset_para uses U(-0.1, 0.1)
    # for the type embedding and asp_fc weight).  Linear weights pre-transposed.
    params = {
        "emb":  u(ks[0], (N_TYPES, E)),
        "inwt": u(ks[1], (NL, E, 3 * E)),
        "inb":  u(ks[2], (NL, 1, 3 * E)),
        "owt":  u(ks[3], (NL, E, E)),
        "ob":   u(ks[4], (NL, 1, E)),
        "ln1w": jnp.ones((NL, 1, E), jnp.float32) + u(ks[5], (NL, 1, E), 0.02),
        "ln1b": u(ks[6], (NL, 1, E), 0.02),
        "l1wt": u(ks[7], (NL, E, FF)),
        "l1b":  u(ks[8], (NL, 1, FF)),
        "l2wt": u(ks[9], (NL, FF, E)),
        "l2b":  u(ks[10], (NL, 1, E)),
        "ln2w": jnp.ones((NL, 1, E), jnp.float32) + u(ks[11], (NL, 1, E), 0.02),
        "ln2b": u(ks[12], (NL, 1, E), 0.02),
        "fcwt": u(ks[13], (E, OUT)),
        "fcb":  u(ks[14], (1, OUT)),
    }

    # Inputs.
    aspect_ids = jax.random.randint(ks[20], (N, 2, L), 0, N_TYPES, jnp.int32)
    masks = jnp.ones((N, L), jnp.float32).at[1, 6:].set(0.0)   # 1 = valid, 0 = pad
    weights = jax.random.uniform(ks[21], (N, L), jnp.float32, 0.0, 1.0)
    ui_feature = 0.5 * jax.random.normal(ks[22], (N, OUT), jnp.float32)
    ent_aspect_rep = 0.5 * jax.random.normal(ks[23], (N, L, E), jnp.float32)

    run = jax.jit(aspect_encode)
    out, attn = run(aspect_ids, masks, weights, ui_feature, ent_aspect_rep, params)
    out = jax.block_until_ready(out)
    attn = jax.block_until_ready(attn)

    ref_out, ref_attn = reference(aspect_ids, masks, weights, ui_feature,
                                  ent_aspect_rep, params)
    assert out.shape == (N, OUT) and attn.shape == (N, L)
    assert jnp.allclose(out, ref_out, atol=1e-4, rtol=1e-4)
    assert jnp.allclose(attn, ref_attn, atol=1e-4, rtol=1e-4)

    print("KERNEL_OK")
</pallas_src>

<mosaic_0001>
module attributes {stable_mosaic.version = 11 : i64} {
  func.func @aspect_encode_kernel(%arg0: memref<16x128xf32, #tpu.memory_space<vmem>>, %arg1: memref<464x32xf32, #tpu.memory_space<vmem>>, %arg2: memref<160x128xf32, #tpu.memory_space<vmem>>, %arg3: memref<2x128xf32, #tpu.memory_space<vmem>>) attributes {dimension_semantics = [], scalar_prefetch = 0 : i64, scratch_operands = 0 : i64, tpu.core_type = #tpu.core_type<tc>} {
    %c0 = arith.constant 0 : index
    %c0_0 = arith.constant 0 : index
    %0 = vector.load %arg0[%c0, %c0_0] : memref<16x128xf32, #tpu.memory_space<vmem>>, vector<16x128xf32>
    %1 = vector.extract_strided_slice %0 {offsets = [0, 0], sizes = [16, 32], strides = [1, 1]} : vector<16x128xf32> to vector<16x32xf32>
    %2 = vector.extract_strided_slice %0 {offsets = [0, 32], sizes = [2, 32], strides = [1, 1]} : vector<16x128xf32> to vector<2x32xf32>
    %3 = vector.extract_strided_slice %0 {offsets = [0, 64], sizes = [16, 16], strides = [1, 1]} : vector<16x128xf32> to vector<16x16xf32>
    %4 = vector.extract_strided_slice %0 {offsets = [0, 80], sizes = [2, 16], strides = [1, 1]} : vector<16x128xf32> to vector<2x16xf32>
    %5 = vector.extract_strided_slice %0 {offsets = [0, 96], sizes = [16, 1], strides = [1, 1]} : vector<16x128xf32> to vector<16x1xf32>
    %6 = vector.extract_strided_slice %0 {offsets = [0, 97], sizes = [16, 1], strides = [1, 1]} : vector<16x128xf32> to vector<16x1xf32>
    %c0_1 = arith.constant 0 : index
    %c0_2 = arith.constant 0 : index
    %7 = vector.load %arg1[%c0_1, %c0_2] : memref<464x32xf32, #tpu.memory_space<vmem>>, vector<8x32xf32>
    %cst = arith.constant 0.000000e+00 : f32
    %8 = vector.broadcast %cst : f32 to vector<16x32xf32>
    %cst_3 = arith.constant 0.000000e+00 : f32
    %9 = vector.broadcast %cst_3 : f32 to vector<16x1xf32>
    %10 = arith.cmpf oeq, %5, %9 : vector<16x1xf32>
    %11 = vector.extract_strided_slice %7 {offsets = [0, 0], sizes = [1, 32], strides = [1, 1]} : vector<8x32xf32> to vector<1x32xf32>
    %cst_4 = arith.constant 0.000000e+00 : f32
    %12 = vector.shape_cast %10 : vector<16x1xi1> to vector<16x1xi1>
    %13 = vector.broadcast %12 : vector<16x1xi1> to vector<16x32xi1>
    %14 = vector.shape_cast %11 : vector<1x32xf32> to vector<1x32xf32>
    %15 = vector.broadcast %14 : vector<1x32xf32> to vector<16x32xf32>
    %16 = vector.broadcast %cst_4 : f32 to vector<16x32xf32>
    %17 = arith.select %13, %15, %16 : vector<16x32xi1>, vector<16x32xf32>
    %18 = arith.addf %8, %17 : vector<16x32xf32>
    %cst_5 = arith.constant 1.000000e+00 : f32
    %19 = vector.broadcast %cst_5 : f32 to vector<16x1xf32>
    %20 = arith.cmpf oeq, %5, %19 : vector<16x1xf32>
    %21 = vector.extract_strided_slice %7 {offsets = [1, 0], sizes = [1, 32], strides = [1, 1]} : vector<8x32xf32> to vector<1x32xf32>
    %cst_6 = arith.constant 0.000000e+00 : f32
    %22 = vector.shape_cast %20 : vector<16x1xi1> to vector<16x1xi1>
    %23 = vector.broadcast %22 : vector<16x1xi1> to vector<16x32xi1>
    %24 = vector.shape_cast %21 : vector<1x32xf32> to vector<1x32xf32>
    %25 = vector.broadcast %24 : vector<1x32xf32> to vector<16x32xf32>
    %26 = vector.broadcast %cst_6 : f32 to vector<16x32xf32>
    %27 = arith.select %23, %25, %26 : vector<16x32xi1>, vector<16x32xf32>
    %28 = arith.addf %18, %27 : vector<16x32xf32>
    %cst_7 = arith.constant 2.000000e+00 : f32
    %29 = vector.broadcast %cst_7 : f32 to vector<16x1xf32>
    %30 = arith.cmpf oeq, %5, %29 : vector<16x1xf32>
    %31 = vector.extract_strided_slice %7 {offsets = [2, 0], sizes = [1, 32], strides = [1, 1]} : vector<8x32xf32> to vector<1x32xf32>
    %cst_8 = arith.constant 0.000000e+00 : f32
    %32 = vector.shape_cast %30 : vector<16x1xi1> to vector<16x1xi1>
    %33 = vector.broadcast %32 : vector<16x1xi1> to vector<16x32xi1>
    %34 = vector.shape_cast %31 : vector<1x32xf32> to vector<1x32xf32>
    %35 = vector.broadcast %34 : vector<1x32xf32> to vector<16x32xf32>
    %36 = vector.broadcast %cst_8 : f32 to vector<16x32xf32>
    %37 = arith.select %33, %35, %36 : vector<16x32xi1>, vector<16x32xf32>
    %38 = arith.addf %28, %37 : vector<16x32xf32>
    %cst_9 = arith.constant 3.000000e+00 : f32
    %39 = vector.broadcast %cst_9 : f32 to vector<16x1xf32>
    %40 = arith.cmpf oeq, %5, %39 : vector<16x1xf32>
    %41 = vector.extract_strided_slice %7 {offsets = [3, 0], sizes = [1, 32], strides = [1, 1]} : vector<8x32xf32> to vector<1x32xf32>
    %cst_10 = arith.constant 0.000000e+00 : f32
    %42 = vector.shape_cast %40 : vector<16x1xi1> to vector<16x1xi1>
    %43 = vector.broadcast %42 : vector<16x1xi1> to vector<16x32xi1>
    %44 = vector.shape_cast %41 : vector<1x32xf32> to vector<1x32xf32>
    %45 = vector.broadcast %44 : vector<1x32xf32> to vector<16x32xf32>
    %46 = vector.broadcast %cst_10 : f32 to vector<16x32xf32>
    %47 = arith.select %43, %45, %46 : vector<16x32xi1>, vector<16x32xf32>
    %48 = arith.addf %38, %47 : vector<16x32xf32>
    %49 = arith.addf %48, %1 : vector<16x32xf32>
    %50 = vector.broadcast %6 : vector<16x1xf32> to vector<16x32xf32>
    %51 = arith.mulf %49, %50 : vector<16x32xf32>
    %c0_11 = arith.constant 0 : index
    %c0_12 = arith.constant 0 : index
    %52 = vector.load %arg2[%c0_11, %c0_12] : memref<160x128xf32, #tpu.memory_space<vmem>>, vector<32x128xf32>
    %c32 = arith.constant 32 : index
    %c0_13 = arith.constant 0 : index
    %53 = vector.load %arg2[%c32, %c0_13] : memref<160x128xf32, #tpu.memory_space<vmem>>, vector<1x128xf32>
    %cst_14 = arith.constant dense<0.000000e+00> : vector<16x128xf32>
    %54 = tpu.matmul %51, %52, %cst_14 {dimension_numbers = #tpu.dot_dimension_numbers<[1], [0], [0], [1], [0, 0, 1, 1], [], []>} : vector<16x32xf32>, vector<32x128xf32>, vector<16x128xf32> -> vector<16x128xf32>
    %55 = vector.broadcast %53 : vector<1x128xf32> to vector<16x128xf32>
    %56 = arith.addf %54, %55 : vector<16x128xf32>
    %57 = vector.extract_strided_slice %56 {offsets = [0, 0], sizes = [16, 8], strides = [1, 1]} : vector<16x128xf32> to vector<16x8xf32>
    %cst_15 = arith.constant 0.353553385 : f32
    %58 = vector.broadcast %cst_15 : f32 to vector<16x8xf32>
    %59 = arith.mulf %57, %58 : vector<16x8xf32>
    %60 = vector.extract_strided_slice %56 {offsets = [0, 32], sizes = [16, 8], strides = [1, 1]} : vector<16x128xf32> to vector<16x8xf32>
    %61 = vector.extract_strided_slice %56 {offsets = [0, 64], sizes = [16, 8], strides = [1, 1]} : vector<16x128xf32> to vector<16x8xf32>
    %cst_16 = arith.constant dense<0.000000e+00> : vector<16x16xf32>
    %62 = tpu.matmul %59, %60, %cst_16 {dimension_numbers = #tpu.dot_dimension_numbers<[1], [1], [0], [0], [0, 0, 1, 0], [], []>} : vector<16x8xf32>, vector<16x8xf32>, vector<16x16xf32> -> vector<16x16xf32>
    %63 = arith.addf %62, %3 : vector<16x16xf32>
    %cst_17 = arith.constant dense<0xFF800000> : vector<16xf32>
    %64 = vector.multi_reduction <maximumf>, %63, %cst_17 [1] : vector<16x16xf32> to vector<16xf32>
    %65 = vector.shape_cast %64 : vector<16xf32> to vector<16x1xf32>
    %66 = vector.broadcast %65 : vector<16x1xf32> to vector<16x16xf32>
    %67 = arith.subf %63, %66 : vector<16x16xf32>
    %68 = math.exp %67 : vector<16x16xf32>
    %cst_18 = arith.constant dense<0.000000e+00> : vector<16xf32>
    %69 = vector.multi_reduction <add>, %68, %cst_18 [1] : vector<16x16xf32> to vector<16xf32>
    %70 = vector.shape_cast %69 : vector<16xf32> to vector<16x1xf32>
    %71 = tpu.reciprocal %70 : vector<16x1xf32> -> vector<16x1xf32>
    %72 = vector.broadcast %71 : vector<16x1xf32> to vector<16x16xf32>
    %73 = arith.mulf %68, %72 : vector<16x16xf32>
    %cst_19 = arith.constant dense<0.000000e+00> : vector<16x8xf32>
    %74 = tpu.matmul %73, %61, %cst_19 {dimension_numbers = #tpu.dot_dimension_numbers<[1], [0], [0], [1], [0, 0, 1, 1], [], []>} : vector<16x16xf32>, vector<16x8xf32>, vector<16x8xf32> -> vector<16x8xf32>
    %75 = vector.extract_strided_slice %56 {offsets = [0, 8], sizes = [16, 8], strides = [1, 1]} : vector<16x128xf32> to vector<16x8xf32>
    %cst_20 = arith.constant 0.353553385 : f32
    %76 = vector.broadcast %cst_20 : f32 to vector<16x8xf32>
    %77 = arith.mulf %75, %76 : vector<16x8xf32>
    %78 = vector.extract_strided_slice %56 {offsets = [0, 40], sizes = [16, 8], strides = [1, 1]} : vector<16x128xf32> to vector<16x8xf32>
    %79 = vector.extract_strided_slice %56 {offsets = [0, 72], sizes = [16, 8], strides = [1, 1]} : vector<16x128xf32> to vector<16x8xf32>
    %cst_21 = arith.constant dense<0.000000e+00> : vector<16x16xf32>
    %80 = tpu.matmul %77, %78, %cst_21 {dimension_numbers = #tpu.dot_dimension_numbers<[1], [1], [0], [0], [0, 0, 1, 0], [], []>} : vector<16x8xf32>, vector<16x8xf32>, vector<16x16xf32> -> vector<16x16xf32>
    %81 = arith.addf %80, %3 : vector<16x16xf32>
    %cst_22 = arith.constant dense<0xFF800000> : vector<16xf32>
    %82 = vector.multi_reduction <maximumf>, %81, %cst_22 [1] : vector<16x16xf32> to vector<16xf32>
    %83 = vector.shape_cast %82 : vector<16xf32> to vector<16x1xf32>
    %84 = vector.broadcast %83 : vector<16x1xf32> to vector<16x16xf32>
    %85 = arith.subf %81, %84 : vector<16x16xf32>
    %86 = math.exp %85 : vector<16x16xf32>
    %cst_23 = arith.constant dense<0.000000e+00> : vector<16xf32>
    %87 = vector.multi_reduction <add>, %86, %cst_23 [1] : vector<16x16xf32> to vector<16xf32>
    %88 = vector.shape_cast %87 : vector<16xf32> to vector<16x1xf32>
    %89 = tpu.reciprocal %88 : vector<16x1xf32> -> vector<16x1xf32>
    %90 = vector.broadcast %89 : vector<16x1xf32> to vector<16x16xf32>
    %91 = arith.mulf %86, %90 : vector<16x16xf32>
    %cst_24 = arith.constant dense<0.000000e+00> : vector<16x8xf32>
    %92 = tpu.matmul %91, %79, %cst_24 {dimension_numbers = #tpu.dot_dimension_numbers<[1], [0], [0], [1], [0, 0, 1, 1], [], []>} : vector<16x16xf32>, vector<16x8xf32>, vector<16x8xf32> -> vector<16x8xf32>
    %93 = vector.extract_strided_slice %56 {offsets = [0, 16], sizes = [16, 8], strides = [1, 1]} : vector<16x128xf32> to vector<16x8xf32>
    %cst_25 = arith.constant 0.353553385 : f32
    %94 = vector.broadcast %cst_25 : f32 to vector<16x8xf32>
    %95 = arith.mulf %93, %94 : vector<16x8xf32>
    %96 = vector.extract_strided_slice %56 {offsets = [0, 48], sizes = [16, 8], strides = [1, 1]} : vector<16x128xf32> to vector<16x8xf32>
    %97 = vector.extract_strided_slice %56 {offsets = [0, 80], sizes = [16, 8], strides = [1, 1]} : vector<16x128xf32> to vector<16x8xf32>
    %cst_26 = arith.constant dense<0.000000e+00> : vector<16x16xf32>
    %98 = tpu.matmul %95, %96, %cst_26 {dimension_numbers = #tpu.dot_dimension_numbers<[1], [1], [0], [0], [0, 0, 1, 0], [], []>} : vector<16x8xf32>, vector<16x8xf32>, vector<16x16xf32> -> vector<16x16xf32>
    %99 = arith.addf %98, %3 : vector<16x16xf32>
    %cst_27 = arith.constant dense<0xFF800000> : vector<16xf32>
    %100 = vector.multi_reduction <maximumf>, %99, %cst_27 [1] : vector<16x16xf32> to vector<16xf32>
    %101 = vector.shape_cast %100 : vector<16xf32> to vector<16x1xf32>
    %102 = vector.broadcast %101 : vector<16x1xf32> to vector<16x16xf32>
    %103 = arith.subf %99, %102 : vector<16x16xf32>
    %104 = math.exp %103 : vector<16x16xf32>
    %cst_28 = arith.constant dense<0.000000e+00> : vector<16xf32>
    %105 = vector.multi_reduction <add>, %104, %cst_28 [1] : vector<16x16xf32> to vector<16xf32>
    %106 = vector.shape_cast %105 : vector<16xf32> to vector<16x1xf32>
    %107 = tpu.reciprocal %106 : vector<16x1xf32> -> vector<16x1xf32>
    %108 = vector.broadcast %107 : vector<16x1xf32> to vector<16x16xf32>
    %109 = arith.mulf %104, %108 : vector<16x16xf32>
    %cst_29 = arith.constant dense<0.000000e+00> : vector<16x8xf32>
    %110 = tpu.matmul %109, %97, %cst_29 {dimension_numbers = #tpu.dot_dimension_numbers<[1], [0], [0], [1], [0, 0, 1, 1], [], []>} : vector<16x16xf32>, vector<16x8xf32>, vector<16x8xf32> -> vector<16x8xf32>
    %111 = vector.extract_strided_slice %56 {offsets = [0, 24], sizes = [16, 8], strides = [1, 1]} : vector<16x128xf32> to vector<16x8xf32>
    %cst_30 = arith.constant 0.353553385 : f32
    %112 = vector.broadcast %cst_30 : f32 to vector<16x8xf32>
    %113 = arith.mulf %111, %112 : vector<16x8xf32>
    %114 = vector.extract_strided_slice %56 {offsets = [0, 56], sizes = [16, 8], strides = [1, 1]} : vector<16x128xf32> to vector<16x8xf32>
    %115 = vector.extract_strided_slice %56 {offsets = [0, 88], sizes = [16, 8], strides = [1, 1]} : vector<16x128xf32> to vector<16x8xf32>
    %cst_31 = arith.constant dense<0.000000e+00> : vector<16x16xf32>
    %116 = tpu.matmul %113, %114, %cst_31 {dimension_numbers = #tpu.dot_dimension_numbers<[1], [1], [0], [0], [0, 0, 1, 0], [], []>} : vector<16x8xf32>, vector<16x8xf32>, vector<16x16xf32> -> vector<16x16xf32>
    %117 = arith.addf %116, %3 : vector<16x16xf32>
    %cst_32 = arith.constant dense<0xFF800000> : vector<16xf32>
    %118 = vector.multi_reduction <maximumf>, %117, %cst_32 [1] : vector<16x16xf32> to vector<16xf32>
    %119 = vector.shape_cast %118 : vector<16xf32> to vector<16x1xf32>
    %120 = vector.broadcast %119 : vector<16x1xf32> to vector<16x16xf32>
    %121 = arith.subf %117, %120 : vector<16x16xf32>
    %122 = math.exp %121 : vector<16x16xf32>
    %cst_33 = arith.constant dense<0.000000e+00> : vector<16xf32>
    %123 = vector.multi_reduction <add>, %122, %cst_33 [1] : vector<16x16xf32> to vector<16xf32>
    %124 = vector.shape_cast %123 : vector<16xf32> to vector<16x1xf32>
    %125 = tpu.reciprocal %124 : vector<16x1xf32> -> vector<16x1xf32>
    %126 = vector.broadcast %125 : vector<16x1xf32> to vector<16x16xf32>
    %127 = arith.mulf %122, %126 : vector<16x16xf32>
    %cst_34 = arith.constant dense<0.000000e+00> : vector<16x8xf32>
    %128 = tpu.matmul %127, %115, %cst_34 {dimension_numbers = #tpu.dot_dimension_numbers<[1], [0], [0], [1], [0, 0, 1, 1], [], []>} : vector<16x16xf32>, vector<16x8xf32>, vector<16x8xf32> -> vector<16x8xf32>
    %129 = tpu.concatenate %74, %92, %110, %128 in 1 : vector<16x8xf32>, vector<16x8xf32>, vector<16x8xf32>, vector<16x8xf32> -> vector<16x32xf32>
    %c8 = arith.constant 8 : index
    %c0_35 = arith.constant 0 : index
    %130 = vector.load %arg1[%c8, %c0_35] : memref<464x32xf32, #tpu.memory_space<vmem>>, vector<32x32xf32>
    %cst_36 = arith.constant dense<0.000000e+00> : vector<16x32xf32>
    %131 = tpu.matmul %129, %130, %cst_36 {dimension_numbers = #tpu.dot_dimension_numbers<[1], [0], [0], [1], [0, 0, 1, 1], [], []>} : vector<16x32xf32>, vector<32x32xf32>, vector<16x32xf32> -> vector<16x32xf32>
    %c40 = arith.constant 40 : index
    %c0_37 = arith.constant 0 : index
    %132 = vector.load %arg1[%c40, %c0_37] : memref<464x32xf32, #tpu.memory_space<vmem>>, vector<1x32xf32>
    %133 = vector.broadcast %132 : vector<1x32xf32> to vector<16x32xf32>
    %134 = arith.addf %131, %133 : vector<16x32xf32>
    %135 = arith.addf %51, %134 : vector<16x32xf32>
    %c48 = arith.constant 48 : index
    %c0_38 = arith.constant 0 : index
    %136 = vector.load %arg1[%c48, %c0_38] : memref<464x32xf32, #tpu.memory_space<vmem>>, vector<1x32xf32>
    %c56 = arith.constant 56 : index
    %c0_39 = arith.constant 0 : index
    %137 = vector.load %arg1[%c56, %c0_39] : memref<464x32xf32, #tpu.memory_space<vmem>>, vector<1x32xf32>
    %cst_40 = arith.constant dense<0.000000e+00> : vector<16xf32>
    %138 = vector.multi_reduction <add>, %135, %cst_40 [1] : vector<16x32xf32> to vector<16xf32>
    %139 = vector.shape_cast %138 : vector<16xf32> to vector<16x1xf32>
    %cst_41 = arith.constant 3.200000e+01 : f32
    %140 = vector.broadcast %cst_41 : f32 to vector<16x1xf32>
    %141 = arith.divf %139, %140 : vector<16x1xf32>
    %142 = vector.broadcast %141 : vector<16x1xf32> to vector<16x32xf32>
    %143 = arith.subf %135, %142 : vector<16x32xf32>
    %144 = arith.mulf %143, %143 : vector<16x32xf32>
    %cst_42 = arith.constant dense<0.000000e+00> : vector<16xf32>
    %145 = vector.multi_reduction <add>, %144, %cst_42 [1] : vector<16x32xf32> to vector<16xf32>
    %146 = vector.shape_cast %145 : vector<16xf32> to vector<16x1xf32>
    %cst_43 = arith.constant 3.200000e+01 : f32
    %147 = vector.broadcast %cst_43 : f32 to vector<16x1xf32>
    %148 = arith.divf %146, %147 : vector<16x1xf32>
    %149 = vector.broadcast %141 : vector<16x1xf32> to vector<16x32xf32>
    %150 = arith.subf %135, %149 : vector<16x32xf32>
    %cst_44 = arith.constant 9.99999974E-6 : f32
    %151 = vector.broadcast %cst_44 : f32 to vector<16x1xf32>
    %152 = arith.addf %148, %151 : vector<16x1xf32>
    %153 = math.rsqrt %152 : vector<16x1xf32>
    %154 = vector.broadcast %153 : vector<16x1xf32> to vector<16x32xf32>
    %155 = arith.mulf %150, %154 : vector<16x32xf32>
    %156 = vector.broadcast %136 : vector<1x32xf32> to vector<16x32xf32>
    %157 = arith.mulf %155, %156 : vector<16x32xf32>
    %158 = vector.broadcast %137 : vector<1x32xf32> to vector<16x32xf32>
    %159 = arith.addf %157, %158 : vector<16x32xf32>
    %c40_45 = arith.constant 40 : index
    %c0_46 = arith.constant 0 : index
    %160 = vector.load %arg2[%c40_45, %c0_46] : memref<160x128xf32, #tpu.memory_space<vmem>>, vector<32x128xf32>
    %cst_47 = arith.constant dense<0.000000e+00> : vector<16x128xf32>
    %161 = tpu.matmul %159, %160, %cst_47 {dimension_numbers = #tpu.dot_dimension_numbers<[1], [0], [0], [1], [0, 0, 1, 1], [], []>} : vector<16x32xf32>, vector<32x128xf32>, vector<16x128xf32> -> vector<16x128xf32>
    %c72 = arith.constant 72 : index
    %c0_48 = arith.constant 0 : index
    %162 = vector.load %arg2[%c72, %c0_48] : memref<160x128xf32, #tpu.memory_space<vmem>>, vector<1x128xf32>
    %163 = vector.broadcast %162 : vector<1x128xf32> to vector<16x128xf32>
    %164 = arith.addf %161, %163 : vector<16x128xf32>
    %cst_49 = arith.constant 0.000000e+00 : f32
    %165 = vector.broadcast %cst_49 : f32 to vector<16x128xf32>
    %166 = arith.maximumf %164, %165 : vector<16x128xf32>
    %c64 = arith.constant 64 : index
    %c0_50 = arith.constant 0 : index
    %167 = vector.load %arg1[%c64, %c0_50] : memref<464x32xf32, #tpu.memory_space<vmem>>, vector<128x32xf32>
    %cst_51 = arith.constant dense<0.000000e+00> : vector<16x32xf32>
    %168 = tpu.matmul %166, %167, %cst_51 {dimension_numbers = #tpu.dot_dimension_numbers<[1], [0], [0], [1], [0, 0, 1, 1], [], []>} : vector<16x128xf32>, vector<128x32xf32>, vector<16x32xf32> -> vector<16x32xf32>
    %c192 = arith.constant 192 : index
    %c0_52 = arith.constant 0 : index
    %169 = vector.load %arg1[%c192, %c0_52] : memref<464x32xf32, #tpu.memory_space<vmem>>, vector<1x32xf32>
    %170 = vector.broadcast %169 : vector<1x32xf32> to vector<16x32xf32>
    %171 = arith.addf %168, %170 : vector<16x32xf32>
    %172 = arith.addf %159, %171 : vector<16x32xf32>
    %c200 = arith.constant 200 : index
    %c0_53 = arith.constant 0 : index
    %173 = vector.load %arg1[%c200, %c0_53] : memref<464x32xf32, #tpu.memory_space<vmem>>, vector<1x32xf32>
    %c208 = arith.constant 208 : index
    %c0_54 = arith.constant 0 : index
    %174 = vector.load %arg1[%c208, %c0_54] : memref<464x32xf32, #tpu.memory_space<vmem>>, vector<1x32xf32>
    %cst_55 = arith.constant dense<0.000000e+00> : vector<16xf32>
    %175 = vector.multi_reduction <add>, %172, %cst_55 [1] : vector<16x32xf32> to vector<16xf32>
    %176 = vector.shape_cast %175 : vector<16xf32> to vector<16x1xf32>
    %cst_56 = arith.constant 3.200000e+01 : f32
    %177 = vector.broadcast %cst_56 : f32 to vector<16x1xf32>
    %178 = arith.divf %176, %177 : vector<16x1xf32>
    %179 = vector.broadcast %178 : vector<16x1xf32> to vector<16x32xf32>
    %180 = arith.subf %172, %179 : vector<16x32xf32>
    %181 = arith.mulf %180, %180 : vector<16x32xf32>
    %cst_57 = arith.constant dense<0.000000e+00> : vector<16xf32>
    %182 = vector.multi_reduction <add>, %181, %cst_57 [1] : vector<16x32xf32> to vector<16xf32>
    %183 = vector.shape_cast %182 : vector<16xf32> to vector<16x1xf32>
    %cst_58 = arith.constant 3.200000e+01 : f32
    %184 = vector.broadcast %cst_58 : f32 to vector<16x1xf32>
    %185 = arith.divf %183, %184 : vector<16x1xf32>
    %186 = vector.broadcast %178 : vector<16x1xf32> to vector<16x32xf32>
    %187 = arith.subf %172, %186 : vector<16x32xf32>
    %cst_59 = arith.constant 9.99999974E-6 : f32
    %188 = vector.broadcast %cst_59 : f32 to vector<16x1xf32>
    %189 = arith.addf %185, %188 : vector<16x1xf32>
    %190 = math.rsqrt %189 : vector<16x1xf32>
    %191 = vector.broadcast %190 : vector<16x1xf32> to vector<16x32xf32>
    %192 = arith.mulf %187, %191 : vector<16x32xf32>
    %193 = vector.broadcast %173 : vector<1x32xf32> to vector<16x32xf32>
    %194 = arith.mulf %192, %193 : vector<16x32xf32>
    %195 = vector.broadcast %174 : vector<1x32xf32> to vector<16x32xf32>
    %196 = arith.addf %194, %195 : vector<16x32xf32>
    %c80 = arith.constant 80 : index
    %c0_60 = arith.constant 0 : index
    %197 = vector.load %arg2[%c80, %c0_60] : memref<160x128xf32, #tpu.memory_space<vmem>>, vector<32x128xf32>
    %c112 = arith.constant 112 : index
    %c0_61 = arith.constant 0 : index
    %198 = vector.load %arg2[%c112, %c0_61] : memref<160x128xf32, #tpu.memory_space<vmem>>, vector<1x128xf32>
    %cst_62 = arith.constant dense<0.000000e+00> : vector<16x128xf32>
    %199 = tpu.matmul %196, %197, %cst_62 {dimension_numbers = #tpu.dot_dimension_numbers<[1], [0], [0], [1], [0, 0, 1, 1], [], []>} : vector<16x32xf32>, vector<32x128xf32>, vector<16x128xf32> -> vector<16x128xf32>
    %200 = vector.broadcast %198 : vector<1x128xf32> to vector<16x128xf32>
    %201 = arith.addf %199, %200 : vector<16x128xf32>
    %202 = vector.extract_strided_slice %201 {offsets = [0, 0], sizes = [16, 8], strides = [1, 1]} : vector<16x128xf32> to vector<16x8xf32>
    %cst_63 = arith.constant 0.353553385 : f32
    %203 = vector.broadcast %cst_63 : f32 to vector<16x8xf32>
    %204 = arith.mulf %202, %203 : vector<16x8xf32>
    %205 = vector.extract_strided_slice %201 {offsets = [0, 32], sizes = [16, 8], strides = [1, 1]} : vector<16x128xf32> to vector<16x8xf32>
    %206 = vector.extract_strided_slice %201 {offsets = [0, 64], sizes = [16, 8], strides = [1, 1]} : vector<16x128xf32> to vector<16x8xf32>
    %cst_64 = arith.constant dense<0.000000e+00> : vector<16x16xf32>
    %207 = tpu.matmul %204, %205, %cst_64 {dimension_numbers = #tpu.dot_dimension_numbers<[1], [1], [0], [0], [0, 0, 1, 0], [], []>} : vector<16x8xf32>, vector<16x8xf32>, vector<16x16xf32> -> vector<16x16xf32>
    %208 = arith.addf %207, %3 : vector<16x16xf32>
    %cst_65 = arith.constant dense<0xFF800000> : vector<16xf32>
    %209 = vector.multi_reduction <maximumf>, %208, %cst_65 [1] : vector<16x16xf32> to vector<16xf32>
    %210 = vector.shape_cast %209 : vector<16xf32> to vector<16x1xf32>
    %211 = vector.broadcast %210 : vector<16x1xf32> to vector<16x16xf32>
    %212 = arith.subf %208, %211 : vector<16x16xf32>
    %213 = math.exp %212 : vector<16x16xf32>
    %cst_66 = arith.constant dense<0.000000e+00> : vector<16xf32>
    %214 = vector.multi_reduction <add>, %213, %cst_66 [1] : vector<16x16xf32> to vector<16xf32>
    %215 = vector.shape_cast %214 : vector<16xf32> to vector<16x1xf32>
    %216 = tpu.reciprocal %215 : vector<16x1xf32> -> vector<16x1xf32>
    %217 = vector.broadcast %216 : vector<16x1xf32> to vector<16x16xf32>
    %218 = arith.mulf %213, %217 : vector<16x16xf32>
    %cst_67 = arith.constant dense<0.000000e+00> : vector<16x8xf32>
    %219 = tpu.matmul %218, %206, %cst_67 {dimension_numbers = #tpu.dot_dimension_numbers<[1], [0], [0], [1], [0, 0, 1, 1], [], []>} : vector<16x16xf32>, vector<16x8xf32>, vector<16x8xf32> -> vector<16x8xf32>
    %220 = vector.extract_strided_slice %201 {offsets = [0, 8], sizes = [16, 8], strides = [1, 1]} : vector<16x128xf32> to vector<16x8xf32>
    %cst_68 = arith.constant 0.353553385 : f32
    %221 = vector.broadcast %cst_68 : f32 to vector<16x8xf32>
    %222 = arith.mulf %220, %221 : vector<16x8xf32>
    %223 = vector.extract_strided_slice %201 {offsets = [0, 40], sizes = [16, 8], strides = [1, 1]} : vector<16x128xf32> to vector<16x8xf32>
    %224 = vector.extract_strided_slice %201 {offsets = [0, 72], sizes = [16, 8], strides = [1, 1]} : vector<16x128xf32> to vector<16x8xf32>
    %cst_69 = arith.constant dense<0.000000e+00> : vector<16x16xf32>
    %225 = tpu.matmul %222, %223, %cst_69 {dimension_numbers = #tpu.dot_dimension_numbers<[1], [1], [0], [0], [0, 0, 1, 0], [], []>} : vector<16x8xf32>, vector<16x8xf32>, vector<16x16xf32> -> vector<16x16xf32>
    %226 = arith.addf %225, %3 : vector<16x16xf32>
    %cst_70 = arith.constant dense<0xFF800000> : vector<16xf32>
    %227 = vector.multi_reduction <maximumf>, %226, %cst_70 [1] : vector<16x16xf32> to vector<16xf32>
    %228 = vector.shape_cast %227 : vector<16xf32> to vector<16x1xf32>
    %229 = vector.broadcast %228 : vector<16x1xf32> to vector<16x16xf32>
    %230 = arith.subf %226, %229 : vector<16x16xf32>
    %231 = math.exp %230 : vector<16x16xf32>
    %cst_71 = arith.constant dense<0.000000e+00> : vector<16xf32>
    %232 = vector.multi_reduction <add>, %231, %cst_71 [1] : vector<16x16xf32> to vector<16xf32>
    %233 = vector.shape_cast %232 : vector<16xf32> to vector<16x1xf32>
    %234 = tpu.reciprocal %233 : vector<16x1xf32> -> vector<16x1xf32>
    %235 = vector.broadcast %234 : vector<16x1xf32> to vector<16x16xf32>
    %236 = arith.mulf %231, %235 : vector<16x16xf32>
    %cst_72 = arith.constant dense<0.000000e+00> : vector<16x8xf32>
    %237 = tpu.matmul %236, %224, %cst_72 {dimension_numbers = #tpu.dot_dimension_numbers<[1], [0], [0], [1], [0, 0, 1, 1], [], []>} : vector<16x16xf32>, vector<16x8xf32>, vector<16x8xf32> -> vector<16x8xf32>
    %238 = vector.extract_strided_slice %201 {offsets = [0, 16], sizes = [16, 8], strides = [1, 1]} : vector<16x128xf32> to vector<16x8xf32>
    %cst_73 = arith.constant 0.353553385 : f32
    %239 = vector.broadcast %cst_73 : f32 to vector<16x8xf32>
    %240 = arith.mulf %238, %239 : vector<16x8xf32>
    %241 = vector.extract_strided_slice %201 {offsets = [0, 48], sizes = [16, 8], strides = [1, 1]} : vector<16x128xf32> to vector<16x8xf32>
    %242 = vector.extract_strided_slice %201 {offsets = [0, 80], sizes = [16, 8], strides = [1, 1]} : vector<16x128xf32> to vector<16x8xf32>
    %cst_74 = arith.constant dense<0.000000e+00> : vector<16x16xf32>
    %243 = tpu.matmul %240, %241, %cst_74 {dimension_numbers = #tpu.dot_dimension_numbers<[1], [1], [0], [0], [0, 0, 1, 0], [], []>} : vector<16x8xf32>, vector<16x8xf32>, vector<16x16xf32> -> vector<16x16xf32>
    %244 = arith.addf %243, %3 : vector<16x16xf32>
    %cst_75 = arith.constant dense<0xFF800000> : vector<16xf32>
    %245 = vector.multi_reduction <maximumf>, %244, %cst_75 [1] : vector<16x16xf32> to vector<16xf32>
    %246 = vector.shape_cast %245 : vector<16xf32> to vector<16x1xf32>
    %247 = vector.broadcast %246 : vector<16x1xf32> to vector<16x16xf32>
    %248 = arith.subf %244, %247 : vector<16x16xf32>
    %249 = math.exp %248 : vector<16x16xf32>
    %cst_76 = arith.constant dense<0.000000e+00> : vector<16xf32>
    %250 = vector.multi_reduction <add>, %249, %cst_76 [1] : vector<16x16xf32> to vector<16xf32>
    %251 = vector.shape_cast %250 : vector<16xf32> to vector<16x1xf32>
    %252 = tpu.reciprocal %251 : vector<16x1xf32> -> vector<16x1xf32>
    %253 = vector.broadcast %252 : vector<16x1xf32> to vector<16x16xf32>
    %254 = arith.mulf %249, %253 : vector<16x16xf32>
    %cst_77 = arith.constant dense<0.000000e+00> : vector<16x8xf32>
    %255 = tpu.matmul %254, %242, %cst_77 {dimension_numbers = #tpu.dot_dimension_numbers<[1], [0], [0], [1], [0, 0, 1, 1], [], []>} : vector<16x16xf32>, vector<16x8xf32>, vector<16x8xf32> -> vector<16x8xf32>
    %256 = vector.extract_strided_slice %201 {offsets = [0, 24], sizes = [16, 8], strides = [1, 1]} : vector<16x128xf32> to vector<16x8xf32>
    %cst_78 = arith.constant 0.353553385 : f32
    %257 = vector.broadcast %cst_78 : f32 to vector<16x8xf32>
    %258 = arith.mulf %256, %257 : vector<16x8xf32>
    %259 = vector.extract_strided_slice %201 {offsets = [0, 56], sizes = [16, 8], strides = [1, 1]} : vector<16x128xf32> to vector<16x8xf32>
    %260 = vector.extract_strided_slice %201 {offsets = [0, 88], sizes = [16, 8], strides = [1, 1]} : vector<16x128xf32> to vector<16x8xf32>
    %cst_79 = arith.constant dense<0.000000e+00> : vector<16x16xf32>
    %261 = tpu.matmul %258, %259, %cst_79 {dimension_numbers = #tpu.dot_dimension_numbers<[1], [1], [0], [0], [0, 0, 1, 0], [], []>} : vector<16x8xf32>, vector<16x8xf32>, vector<16x16xf32> -> vector<16x16xf32>
    %262 = arith.addf %261, %3 : vector<16x16xf32>
    %cst_80 = arith.constant dense<0xFF800000> : vector<16xf32>
    %263 = vector.multi_reduction <maximumf>, %262, %cst_80 [1] : vector<16x16xf32> to vector<16xf32>
    %264 = vector.shape_cast %263 : vector<16xf32> to vector<16x1xf32>
    %265 = vector.broadcast %264 : vector<16x1xf32> to vector<16x16xf32>
    %266 = arith.subf %262, %265 : vector<16x16xf32>
    %267 = math.exp %266 : vector<16x16xf32>
    %cst_81 = arith.constant dense<0.000000e+00> : vector<16xf32>
    %268 = vector.multi_reduction <add>, %267, %cst_81 [1] : vector<16x16xf32> to vector<16xf32>
    %269 = vector.shape_cast %268 : vector<16xf32> to vector<16x1xf32>
    %270 = tpu.reciprocal %269 : vector<16x1xf32> -> vector<16x1xf32>
    %271 = vector.broadcast %270 : vector<16x1xf32> to vector<16x16xf32>
    %272 = arith.mulf %267, %271 : vector<16x16xf32>
    %cst_82 = arith.constant dense<0.000000e+00> : vector<16x8xf32>
    %273 = tpu.matmul %272, %260, %cst_82 {dimension_numbers = #tpu.dot_dimension_numbers<[1], [0], [0], [1], [0, 0, 1, 1], [], []>} : vector<16x16xf32>, vector<16x8xf32>, vector<16x8xf32> -> vector<16x8xf32>
    %274 = tpu.concatenate %219, %237, %255, %273 in 1 : vector<16x8xf32>, vector<16x8xf32>, vector<16x8xf32>, vector<16x8xf32> -> vector<16x32xf32>
    %c216 = arith.constant 216 : index
    %c0_83 = arith.constant 0 : index
    %275 = vector.load %arg1[%c216, %c0_83] : memref<464x32xf32, #tpu.memory_space<vmem>>, vector<32x32xf32>
    %cst_84 = arith.constant dense<0.000000e+00> : vector<16x32xf32>
    %276 = tpu.matmul %274, %275, %cst_84 {dimension_numbers = #tpu.dot_dimension_numbers<[1], [0], [0], [1], [0, 0, 1, 1], [], []>} : vector<16x32xf32>, vector<32x32xf32>, vector<16x32xf32> -> vector<16x32xf32>
    %c248 = arith.constant 248 : index
    %c0_85 = arith.constant 0 : index
    %277 = vector.load %arg1[%c248, %c0_85] : memref<464x32xf32, #tpu.memory_space<vmem>>, vector<1x32xf32>
    %278 = vector.broadcast %277 : vector<1x32xf32> to vector<16x32xf32>
    %279 = arith.addf %276, %278 : vector<16x32xf32>
    %280 = arith.addf %196, %279 : vector<16x32xf32>
    %c256 = arith.constant 256 : index
    %c0_86 = arith.constant 0 : index
    %281 = vector.load %arg1[%c256, %c0_86] : memref<464x32xf32, #tpu.memory_space<vmem>>, vector<1x32xf32>
    %c264 = arith.constant 264 : index
    %c0_87 = arith.constant 0 : index
    %282 = vector.load %arg1[%c264, %c0_87] : memref<464x32xf32, #tpu.memory_space<vmem>>, vector<1x32xf32>
    %cst_88 = arith.constant dense<0.000000e+00> : vector<16xf32>
    %283 = vector.multi_reduction <add>, %280, %cst_88 [1] : vector<16x32xf32> to vector<16xf32>
    %284 = vector.shape_cast %283 : vector<16xf32> to vector<16x1xf32>
    %cst_89 = arith.constant 3.200000e+01 : f32
    %285 = vector.broadcast %cst_89 : f32 to vector<16x1xf32>
    %286 = arith.divf %284, %285 : vector<16x1xf32>
    %287 = vector.broadcast %286 : vector<16x1xf32> to vector<16x32xf32>
    %288 = arith.subf %280, %287 : vector<16x32xf32>
    %289 = arith.mulf %288, %288 : vector<16x32xf32>
    %cst_90 = arith.constant dense<0.000000e+00> : vector<16xf32>
    %290 = vector.multi_reduction <add>, %289, %cst_90 [1] : vector<16x32xf32> to vector<16xf32>
    %291 = vector.shape_cast %290 : vector<16xf32> to vector<16x1xf32>
    %cst_91 = arith.constant 3.200000e+01 : f32
    %292 = vector.broadcast %cst_91 : f32 to vector<16x1xf32>
    %293 = arith.divf %291, %292 : vector<16x1xf32>
    %294 = vector.broadcast %286 : vector<16x1xf32> to vector<16x32xf32>
    %295 = arith.subf %280, %294 : vector<16x32xf32>
    %cst_92 = arith.constant 9.99999974E-6 : f32
    %296 = vector.broadcast %cst_92 : f32 to vector<16x1xf32>
    %297 = arith.addf %293, %296 : vector<16x1xf32>
    %298 = math.rsqrt %297 : vector<16x1xf32>
    %299 = vector.broadcast %298 : vector<16x1xf32> to vector<16x32xf32>
    %300 = arith.mulf %295, %299 : vector<16x32xf32>
    %301 = vector.broadcast %281 : vector<1x32xf32> to vector<16x32xf32>
    %302 = arith.mulf %300, %301 : vector<16x32xf32>
    %303 = vector.broadcast %282 : vector<1x32xf32> to vector<16x32xf32>
    %304 = arith.addf %302, %303 : vector<16x32xf32>
    %c120 = arith.constant 120 : index
    %c0_93 = arith.constant 0 : index
    %305 = vector.load %arg2[%c120, %c0_93] : memref<160x128xf32, #tpu.memory_space<vmem>>, vector<32x128xf32>
    %cst_94 = arith.constant dense<0.000000e+00> : vector<16x128xf32>
    %306 = tpu.matmul %304, %305, %cst_94 {dimension_numbers = #tpu.dot_dimension_numbers<[1], [0], [0], [1], [0, 0, 1, 1], [], []>} : vector<16x32xf32>, vector<32x128xf32>, vector<16x128xf32> -> vector<16x128xf32>
    %c152 = arith.constant 152 : index
    %c0_95 = arith.constant 0 : index
    %307 = vector.load %arg2[%c152, %c0_95] : memref<160x128xf32, #tpu.memory_space<vmem>>, vector<1x128xf32>
    %308 = vector.broadcast %307 : vector<1x128xf32> to vector<16x128xf32>
    %309 = arith.addf %306, %308 : vector<16x128xf32>
    %cst_96 = arith.constant 0.000000e+00 : f32
    %310 = vector.broadcast %cst_96 : f32 to vector<16x128xf32>
    %311 = arith.maximumf %309, %310 : vector<16x128xf32>
    %c272 = arith.constant 272 : index
    %c0_97 = arith.constant 0 : index
    %312 = vector.load %arg1[%c272, %c0_97] : memref<464x32xf32, #tpu.memory_space<vmem>>, vector<128x32xf32>
    %cst_98 = arith.constant dense<0.000000e+00> : vector<16x32xf32>
    %313 = tpu.matmul %311, %312, %cst_98 {dimension_numbers = #tpu.dot_dimension_numbers<[1], [0], [0], [1], [0, 0, 1, 1], [], []>} : vector<16x128xf32>, vector<128x32xf32>, vector<16x32xf32> -> vector<16x32xf32>
    %c400 = arith.constant 400 : index
    %c0_99 = arith.constant 0 : index
    %314 = vector.load %arg1[%c400, %c0_99] : memref<464x32xf32, #tpu.memory_space<vmem>>, vector<1x32xf32>
    %315 = vector.broadcast %314 : vector<1x32xf32> to vector<16x32xf32>
    %316 = arith.addf %313, %315 : vector<16x32xf32>
    %317 = arith.addf %304, %316 : vector<16x32xf32>
    %c408 = arith.constant 408 : index
    %c0_100 = arith.constant 0 : index
    %318 = vector.load %arg1[%c408, %c0_100] : memref<464x32xf32, #tpu.memory_space<vmem>>, vector<1x32xf32>
    %c416 = arith.constant 416 : index
    %c0_101 = arith.constant 0 : index
    %319 = vector.load %arg1[%c416, %c0_101] : memref<464x32xf32, #tpu.memory_space<vmem>>, vector<1x32xf32>
    %cst_102 = arith.constant dense<0.000000e+00> : vector<16xf32>
    %320 = vector.multi_reduction <add>, %317, %cst_102 [1] : vector<16x32xf32> to vector<16xf32>
    %321 = vector.shape_cast %320 : vector<16xf32> to vector<16x1xf32>
    %cst_103 = arith.constant 3.200000e+01 : f32
    %322 = vector.broadcast %cst_103 : f32 to vector<16x1xf32>
    %323 = arith.divf %321, %322 : vector<16x1xf32>
    %324 = vector.broadcast %323 : vector<16x1xf32> to vector<16x32xf32>
    %325 = arith.subf %317, %324 : vector<16x32xf32>
    %326 = arith.mulf %325, %325 : vector<16x32xf32>
    %cst_104 = arith.constant dense<0.000000e+00> : vector<16xf32>
    %327 = vector.multi_reduction <add>, %326, %cst_104 [1] : vector<16x32xf32> to vector<16xf32>
    %328 = vector.shape_cast %327 : vector<16xf32> to vector<16x1xf32>
    %cst_105 = arith.constant 3.200000e+01 : f32
    %329 = vector.broadcast %cst_105 : f32 to vector<16x1xf32>
    %330 = arith.divf %328, %329 : vector<16x1xf32>
    %331 = vector.broadcast %323 : vector<16x1xf32> to vector<16x32xf32>
    %332 = arith.subf %317, %331 : vector<16x32xf32>
    %cst_106 = arith.constant 9.99999974E-6 : f32
    %333 = vector.broadcast %cst_106 : f32 to vector<16x1xf32>
    %334 = arith.addf %330, %333 : vector<16x1xf32>
    %335 = math.rsqrt %334 : vector<16x1xf32>
    %336 = vector.broadcast %335 : vector<16x1xf32> to vector<16x32xf32>
    %337 = arith.mulf %332, %336 : vector<16x32xf32>
    %338 = vector.broadcast %318 : vector<1x32xf32> to vector<16x32xf32>
    %339 = arith.mulf %337, %338 : vector<16x32xf32>
    %340 = vector.broadcast %319 : vector<1x32xf32> to vector<16x32xf32>
    %341 = arith.addf %339, %340 : vector<16x32xf32>
    %c424 = arith.constant 424 : index
    %c0_107 = arith.constant 0 : index
    %342 = vector.load %arg1[%c424, %c0_107] : memref<464x32xf32, #tpu.memory_space<vmem>>, vector<32x32xf32>
    %cst_108 = arith.constant dense<0.000000e+00> : vector<16x32xf32>
    %343 = tpu.matmul %341, %342, %cst_108 {dimension_numbers = #tpu.dot_dimension_numbers<[1], [0], [0], [1], [0, 0, 1, 1], [], []>} : vector<16x32xf32>, vector<32x32xf32>, vector<16x32xf32> -> vector<16x32xf32>
    %c456 = arith.constant 456 : index
    %c0_109 = arith.constant 0 : index
    %344 = vector.load %arg1[%c456, %c0_109] : memref<464x32xf32, #tpu.memory_space<vmem>>, vector<1x32xf32>
    %345 = vector.broadcast %344 : vector<1x32xf32> to vector<16x32xf32>
    %346 = arith.addf %343, %345 : vector<16x32xf32>
    %cst_110 = arith.constant dense<0.000000e+00> : vector<2x16xf32>
    %347 = tpu.matmul %2, %346, %cst_110 {dimension_numbers = #tpu.dot_dimension_numbers<[1], [1], [0], [0], [0, 0, 1, 0], [], []>} : vector<2x32xf32>, vector<16x32xf32>, vector<2x16xf32> -> vector<2x16xf32>
    %cst_111 = arith.constant 0.000000e+00 : f32
    %348 = vector.broadcast %cst_111 : f32 to vector<2x16xf32>
    %349 = arith.cmpf oeq, %4, %348 : vector<2x16xf32>
    %cst_112 = arith.constant -1.000000e+20 : f32
    %350 = vector.broadcast %cst_112 : f32 to vector<2x16xf32>
    %351 = arith.select %349, %350, %347 : vector<2x16xi1>, vector<2x16xf32>
    %cst_113 = arith.constant dense<0xFF800000> : vector<2xf32>
    %352 = vector.multi_reduction <maximumf>, %351, %cst_113 [1] : vector<2x16xf32> to vector<2xf32>
    %353 = vector.shape_cast %352 : vector<2xf32> to vector<2x1xf32>
    %354 = vector.broadcast %353 : vector<2x1xf32> to vector<2x16xf32>
    %355 = arith.subf %351, %354 : vector<2x16xf32>
    %356 = math.exp %355 : vector<2x16xf32>
    %cst_114 = arith.constant dense<0.000000e+00> : vector<2xf32>
    %357 = vector.multi_reduction <add>, %356, %cst_114 [1] : vector<2x16xf32> to vector<2xf32>
    %358 = vector.shape_cast %357 : vector<2xf32> to vector<2x1xf32>
    %359 = tpu.reciprocal %358 : vector<2x1xf32> -> vector<2x1xf32>
    %360 = vector.broadcast %359 : vector<2x1xf32> to vector<2x16xf32>
    %361 = arith.mulf %356, %360 : vector<2x16xf32>
    %cst_115 = arith.constant dense<0.000000e+00> : vector<2x32xf32>
    %362 = tpu.matmul %361, %346, %cst_115 {dimension_numbers = #tpu.dot_dimension_numbers<[1], [0], [0], [1], [0, 0, 1, 1], [], []>} : vector<2x16xf32>, vector<16x32xf32>, vector<2x32xf32> -> vector<2x32xf32>
    %363 = math.tanh %362 : vector<2x32xf32>
    %cst_116 = arith.constant 0.000000e+00 : f32
    %364 = vector.broadcast %cst_116 : f32 to vector<2x80xf32>
    %365 = tpu.concatenate %363, %361, %364 in 1 : vector<2x32xf32>, vector<2x16xf32>, vector<2x80xf32> -> vector<2x128xf32>
    %c0_117 = arith.constant 0 : index
    %c0_118 = arith.constant 0 : index
    %366 = vector.load %arg3[%c0_117, %c0_118] : memref<2x128xf32, #tpu.memory_space<vmem>>, vector<2x128xf32>
    tpu.vector_store %arg3[%c0_117, %c0_118], %365 {strides = array<i32>} : memref<2x128xf32, #tpu.memory_space<vmem>>, vector<2x128xf32>,
    return
  }
}

</mosaic_0001>

<bundles_post_ra>
// kernel: aspect_encode.1
= control target key start
LH: loop header
LB: loop body
LE: loop exit
PB: predicated region body
PF: predicated region fallthrough
CT: control target
= control target key end

     0   :  { %v2042_v0 = vmov 96   ;;  %v2043_v3 = vmov 0   ;;  %v2044_v12 = vmov 97   ;;  %s2045_s28 = smov 96   ;;  %s2046_s29 = smov 64   ;;  %s2719_s0 = inlined_call_operand.vmem [shape: f32[16,128], index: 0, kind: input, shape index: {}]   ;;  %s2720_s1 = inlined_call_operand.vmem [shape: f32[464,32], index: 1, kind: input, shape index: {}]   ;;  %s2721_s2 = inlined_call_operand.vmem [shape: f32[160,128], index: 2, kind: input, shape index: {}]   ;;  %s2722_s3 = inlined_call_operand.vmem [shape: f32[2,128], index: 3, kind: output, shape index: {}]  }
   0x1   :  { %1892 = vset.pattern.permute.xlu1 %v2042_v0  ;;  %1891 = vset.pattern.permute.xlu0 %v2042_v0  ;;  %v2083_v1 = vld [vmem:[%s2719_s0] sm:$0xff]  ;;  %v2088_v2 = vld [vmem:[%s2719_s0 + $0x8] sm:$0xff]  ;;  %v102_v13 = vld [vmem:[%s2721_s2 + $0x18] sm:$0xff]  ;;  %s2047_s30 = smov 88   ;;  %s2048_s4 = smov 120  }
   0x2   :  { %vm51_vm0 = vcmp.eq.f32.partialorder %v2083_v1, 2.0  ;;  %vm17_vm1 = vcmp.eq.f32.partialorder %v2083_v1, 0.0  ;;  %vm68_vm2 = vcmp.eq.f32.partialorder %v2083_v1, 3.0  ;;  %1893 = vset.pattern.permute.xlu2 %v2042_v0  ;;  %vm34_vm3 = vcmp.eq.f32.partialorder %v2083_v1, 1.0  ;;  %v101_v14 = vld [vmem:[%s2721_s2 + $0x10] sm:$0xff]  ;;  %124 = vmatpush.msra.mxu0 %v102_v13  ;;  %v100_v15 = vld [vmem:[%s2721_s2 + $0x8] sm:$0xff] }
   0x3   :  { %v53_v4 = vsel %vm51_vm0, 1, %v2043_v3  ;;  %v19_v5 = vsel %vm17_vm1, 1, %v2043_v3  ;;  %vm18_vm4 = vcmp.eq.f32.partialorder %v2088_v2, 0.0  ;;  %v70_v6 = vsel %vm68_vm2, 1, %v2043_v3  ;;  %v99_v16 = vld [vmem:[%s2721_s2] sm:$0xff]  ;;  %s2049_s5 = smov 72  }
   0x4   :  { %56 = vperm.xlu1 %1892, %v53_v4   ;;  %22 = vperm.xlu0 %1891, %v19_v5   ;;  %v20_v7 = vsel %vm18_vm4, 1, %v2043_v3  ;;  %v36_v8 = vsel %vm34_vm3, 1, %v2043_v3  ;;  %vm35_vm5 = vcmp.eq.f32.partialorder %v2088_v2, 1.0  ;;  %vm52_vm6 = vcmp.eq.f32.partialorder %v2088_v2, 2.0  ;;  %v16_v20 = vld [vmem:[%s2720_s1] sm:$0xff]  ;;  %s2050_s6 = smov 80  }
   0x5   :  { %25 = vperm.xlu2 %1893, %v20_v7   ;;  %v37_v9 = vsel %vm35_vm5, 1, %v2043_v3  ;;  %vm69_vm7 = vcmp.eq.f32.partialorder %v2088_v2, 3.0  ;;  %v54_v10 = vsel %vm52_vm6, 1, %v2043_v3  ;;  %125 = vmatpush.msra.mxu0 %v101_v14  ;;  %v29_v22 = vperm.slane %v16_v20, 0  ;;  %v1936_v50 = vld [vmem:[%s2721_s2 + $0x20] ss:$0 sm:$0xff] }
   0x6   :  { %v71_v11 = vsel %vm69_vm7, 1, %v2043_v3  ;;  %v46_v23 = vperm.slane %v16_v20, 1  ;;  %v63_v24 = vperm.slane %v16_v20, 2  ;;  %v80_v31 = vperm.slane %v16_v20, 3  ;;  %s2051_s7 = smov 112   ;;  %s2052_s8 = smov 104  }
   0x7   :  { %126 = vmatpush.msra.mxu0 %v100_v15  ;;  %vm105_vm0 = vcmask 261120   ;;  %vm149_vm2 = vcmask 64512   ;;  %vm183_vm3 = vcmask 130048   ;;  %s2053_s9 = smov 56   ;;  %s2054_s10 = smov 48  }
   0x8   :  { %s2055_s11 = smov 40   ;;  %s2056_s12 = smov 8  }
   0x9   :  { %127 = vmatpush.msra.mxu0 %v99_v16  ;;  %s2057_s13 = smov 16   ;;  %s2058_s14 = smov 24  }
   0xc   :  { %73 = vperm.xlu1 %1892, %v70_v6   ;;  %39 = vperm.xlu0 %1891, %v36_v8  }
   0xd   :  { %42 = vperm.xlu2 %1893, %v37_v9  }
  0x14   :  { %59 = vperm.xlu0 %1891, %v54_v10   ;;  %1894 = vset.pattern.permute.xlu1 %v2044_v12 }
  0x15   :  { %89 = vperm.xlu1 %1894, %v2083_v1   ;;  %76 = vperm.xlu2 %1893, %v71_v11  }
  0x1c   :  { %1895 = vset.pattern.permute.xlu0 %v2044_v12 }
  0x1d   :  { %94 = vperm.xlu0 %1895, %v2088_v2  }
  0x5f   :  { %v26_v17 = vpop.permute.xlu2 %25 }
  0x60   :  { %vm28_vm11 = vcmp.eq.s32.totalorder %v26_v17, 1 }
  0x61   :  { %v31_v33 = vsel %vm28_vm11, %v29_v22, 0.0 }
  0x67   :  { %v43_v21 = vpop.permute.xlu2 %42 }
  0x68   :  { %vm45_vm12 = vcmp.eq.s32.totalorder %v43_v21, 1 }
  0x69   :  { %v48_v34 = vsel %vm45_vm12, %v46_v23, 0.0 }
  0x6a   :  { %v50_v39 = vadd.f32 %v48_v34, %v31_v33 }
  0x6f   :  { %v77_v35 = vpop.permute.xlu2 %76 }
  0x70   :  { %vm79_vm14 = vcmp.eq.s32.totalorder %v77_v35, 1 }
  0x71   :  { %v82_v45 = vsel %vm79_vm14, %v80_v31, 0.0 }
  0x76   :  { %v57_v18 = vpop.permute.xlu1 %56  ;;  %v23_v19 = vpop.permute.xlu0 %22 }
  0x77   :  { %vm27_vm8 = vcmp.eq.s32.totalorder %v23_v19, 1  ;;  %vm61_vm9 = vcmp.eq.s32.totalorder %v57_v18, 1 }
  0x78   :  { %v30_v27 = vsel %vm27_vm8, %v29_v22, 0.0  ;;  %v64_v30 = vsel %vm61_vm9, %v63_v24, 0.0 }
  0x7e   :  { %v74_v25 = vpop.permute.xlu1 %73  ;;  %v40_v26 = vpop.permute.xlu0 %39 }
  0x7f   :  { %vm44_vm10 = vcmp.eq.s32.totalorder %v40_v26, 1  ;;  %vm78_vm13 = vcmp.eq.s32.totalorder %v74_v25, 1 }
  0x80   :  { %v47_v28 = vsel %vm44_vm10, %v46_v23, 0.0  ;;  %v81_v36 = vsel %vm78_vm13, %v80_v31, 0.0 }
  0x81   :  { %v49_v29 = vadd.f32 %v47_v28, %v30_v27 }
  0x83   :  { %v66_v32 = vadd.f32 %v64_v30, %v49_v29 }
  0x85   :  { %v83_v37 = vadd.f32 %v81_v36, %v66_v32 }
  0x86   :  { %v60_v38 = vpop.permute.xlu0 %59 }
  0x87   :  { %vm62_vm15 = vcmp.eq.s32.totalorder %v60_v38, 1  ;;  %v90_v40 = vpop.permute.xlu1 %89  ;;  %v85_v41 = vadd.f32 %v83_v37, %v2083_v1 }
  0x88   :  { %v65_v42 = vsel %vm62_vm15, %v63_v24, 0.0 }
  0x89   :  { %v67_v43 = vadd.f32 %v65_v42, %v50_v39  ;;  %v2118_v44 = vmul.f32 %v90_v40, %v85_v41 }
  0x8b   :  { %1805 = vmatmul.msk.f32.vlgmr.msra.gmra.mxu0 %vm105_vm0, %v2118_v44  ;;  %v84_v46 = vadd.f32 %v82_v45, %v67_v43 }
  0x8d   :  { %v86_v47 = vadd.f32 %v84_v46, %v2088_v2 }
  0x8f   :  { %v95_v48 = vpop.permute.xlu0 %94 }
  0x90   :  { %v2123_v49 = vmul.f32 %v95_v48, %v86_v47 }
  0x93   :  { %1806 = vmatmul.msk.f32.gmra.mxu0 %vm105_vm0, %v2123_v49 }
 0x108   :  { %v129_v51 = vpop.f32.mrf.mxu0 }
 0x109   :  { %v130_v52 = vadd.f32 %v1936_v50, %v129_v51 }
 0x10b   :  { %139 = vrot.lane.b32.xlu2 %v130_v52, %s2045_s28  ;;  %v135_v56 = vmul.f32 0.35355338, %v130_v52 }
 0x110   :  { %v132_v53 = vpop.f32.mrf.mxu0 }
 0x111   :  { %v133_v54 = vadd.f32 %v1936_v50, %v132_v53 }
 0x113   :  { %141 = vrot.lane.b32.xlu1 %v133_v54, %s2045_s28  ;;  %v2134_v55 = vpack.i.bf16 %v130_v52, %v133_v54  ;;  %v136_v57 = vmul.f32 0.35355338, %v133_v54 }
 0x11b   :  { %145 = vrot.lane.b32.xlu1 %v2088_v2, %s2046_s29 }
 0x123   :  { %1897 = vrot.lane.b32.xlu1 %v2134_v55, %s2046_s29 }
 0x12b   :  { %273 = vrot.lane.b32.xlu1 %v133_v54, %s2047_s30 }
 0x133   :  { %271 = vrot.lane.b32.xlu1 %v130_v52, %s2047_s30 }
 0x13b   :  { %267 = vrot.lane.b32.xlu1 %v135_v56, %s2048_s4 }
 0x143   :  { %269 = vrot.lane.b32.xlu1 %v136_v57, %s2048_s4 }
 0x14b   :  { %515 = vrot.lane.b32.xlu1 %v130_v52, %s2049_s5 }
 0x153   :  { %395 = vrot.lane.b32.xlu1 %v133_v54, %s2050_s6 }
 0x15b   :  { %393 = vrot.lane.b32.xlu1 %v130_v52, %s2050_s6 }
 0x163   :  { %391 = vrot.lane.b32.xlu1 %v136_v57, %s2051_s7 }
 0x165   :  { %v140_v59 = vpop.permute.xlu2 %139 }
 0x185   :  { %v142_v58 = vpop.permute.xlu1 %141 }
 0x186   :  { %1807 = vmatpush.xpose.msk.msra.mxu1 %vm149_vm2, %v142_v58 }
 0x18a   :  { %1808 = vmatpush.xpose.msk.msra.mxu1 %vm149_vm2, %v140_v59 }
 0x18d   :  { %1809 = vmatmul.msk.f32.vlgmr.msra.gmra.mxu1 %vm149_vm2, %v135_v56  ;;  %v2149_v60 = vpop.permute.xlu1 %145 }
 0x195   :  { %v1898_v61 = vpop.permute.xlu1 %1897  ;;  %1810 = vmatmul.msk.f32.gmra.mxu1 %vm149_vm2, %v136_v57 }
 0x196   :  { %v1899_v62 = vunpack.i.l.bf16 %v1898_v61  ;;  %v1900_v63 = vunpack.i.h.bf16 %v1898_v61 }
 0x198   :  { %258 = vmatpush.msrb.mxu1 %v1899_v62  ;;  %1871 = vmatpush.msra.mxu3 %v1899_v62 }
 0x19a   :  { %259 = vmatpush.msrb.mxu1 %v1900_v63  ;;  %1872 = vmatpush.msra.mxu3 %v1900_v63 }
 0x19d   :  { %v274_v0 = vpop.permute.xlu1 %273 }
 0x19e   :  { %1813 = vmatpush.xpose.msk.msrb.mxu3 %vm149_vm2, %v274_v0 }
 0x1a5   :  { %v272_v2 = vpop.permute.xlu1 %271 }
 0x1a6   :  { %1814 = vmatpush.xpose.msk.msrb.mxu3 %vm149_vm2, %v272_v2 }
 0x1ad   :  { %v268_v3 = vpop.permute.xlu1 %267 }
 0x1b5   :  { %v270_v4 = vpop.permute.xlu1 %269 }
 0x1bd   :  { %v516_v5 = vpop.permute.xlu1 %515 }
 0x1c5   :  { %v396_v6 = vpop.permute.xlu1 %395 }
 0x1c6   :  { %1819 = vmatpush.xpose.msk.msrb.mxu0 %vm149_vm2, %v396_v6 }
 0x1cd   :  { %v394_v7 = vpop.permute.xlu1 %393 }
 0x1ce   :  { %1820 = vmatpush.xpose.msk.msrb.mxu0 %vm149_vm2, %v394_v7 }
 0x1d5   :  { %v392_v36 = vpop.permute.xlu1 %391 }
 0x20a   :  { %v177_v8 = vpop.f32.mrf.mxu1 }
 0x212   :  { %v180_v9 = vpop.f32.mrf.mxu1 }
 0x213   :  { %v181_v10 = vadd.f32 %v180_v9, %v2149_v60 }
 0x215   :  { %v187_v11 = vsel %vm183_vm3, %v181_v10, -inf }
 0x216   :  { %188 = vmax.xlane.f32.xlu2 %v187_v11 }
 0x22e   :  { %517 = vrot.lane.b32.xlu2 %v133_v54, %s2049_s5 }
 0x236   :  { %513 = vrot.lane.b32.xlu2 %v136_v57, %s2052_s8 }
 0x23e   :  { %143 = vrot.lane.b32.xlu2 %v2083_v1, %s2046_s29 }
 0x289   :  { %v189_v12 = vpop.xlane.xlu2 %188 }
 0x28a   :  { %v191_v13 = vsub.f32 %v181_v10, %v189_v12 }
 0x28c   :  { %v194_v14 = vmul.f32 1.442695, %v191_v13 }
 0x28e   :  { %1953 = vpow2.f32 %v194_v14 }
 0x291   :  { %v518_v15 = vpop.permute.xlu2 %517 }
 0x294   :  { %v1954_v16 = vpop.eup %1953 }
 0x295   :  { %v199_v17 = vsel %vm183_vm3, %v1954_v16, 0.0 }
 0x296   :  { %200 = vadd.xlane.f32.xlu0 %v199_v17 }
 0x299   :  { %v514_v18 = vpop.permute.xlu2 %513 }
 0x2a1   :  { %v2163_v19 = vpop.permute.xlu2 %143 }
 0x2a2   :  { %v178_v20 = vadd.f32 %v177_v8, %v2163_v19 }
 0x2a4   :  { %v184_v21 = vsel %vm183_vm3, %v178_v20, -inf }
 0x2a5   :  { %185 = vmax.xlane.f32.xlu2 %v184_v21 }
 0x2aa   :  { %511 = vrot.lane.b32.xlu0 %v135_v56, %s2052_s8 }
 0x2b2   :  { %389 = vrot.lane.b32.xlu0 %v135_v56, %s2051_s7 }
 0x309   :  { %v201_v22 = vpop.xlane.xlu0 %200 }
 0x30a   :  { %1955 = vrcp.f32 %v201_v22  ;;  %v227_v26 = vand.u32 2147483648, %v201_v22  ;;  %v225_v28 = vand.u32 2147483647, %v201_v22  ;;  %vm221_vm5 = vweird.f32 %v201_v22 }
 0x30c   :  { %v228_v30 = vor.u32 1.1754944e-38, %v227_v26  ;;  %vm226_vm7 = vcmp.eq.f32.partialorder %v225_v28, 8.507059e+37 }
 0x310   :  { %v1956_v23 = vpop.eup %1955 }
 0x311   :  { %v217_v24 = vmul.f32 %v1956_v23, %v201_v22  ;;  %vm222_vm4 = vweird.f32 %v1956_v23 }
 0x312   :  { %vm223_vm6 = vmor %vm221_vm5, %vm222_vm4 }
 0x313   :  { %v218_v25 = vsub.f32 1.0, %v217_v24 }
 0x315   :  { %v219_v27 = vmul.f32 %v1956_v23, %v218_v25 }
 0x317   :  { %v220_v29 = vadd.f32 %v1956_v23, %v219_v27 }
 0x318   :  { %v186_v46 = vpop.xlane.xlu2 %185 }
 0x319   :  { %v224_v31 = vsel %vm223_vm6, %v1956_v23, %v220_v29  ;;  %v190_v51 = vsub.f32 %v178_v20, %v186_v46 }
 0x31a   :  { %v229_v32 = vsel %vm226_vm7, %v228_v30, %v224_v31 }
 0x31b   :  { %v231_v33 = vmul.f32 %v1954_v16, %v229_v32  ;;  %v192_v56 = vmul.f32 1.442695, %v190_v51 }
 0x31c   :  { %v512_v34 = vpop.permute.xlu0 %511 }
 0x31d   :  { %1812 = vmatmul.msk.f32.vlgmr.msra.gmra.mxu3 %vm183_vm3, %v231_v33  ;;  %1957 = vpow2.f32 %v192_v56 }
 0x31e   :  { %1825 = vmatpush.xpose.msk.msra.mxu3 %vm149_vm2, %v518_v15 }
 0x322   :  { %1826 = vmatpush.xpose.msk.msra.mxu3 %vm149_vm2, %v516_v5 }
 0x323   :  { %v2192_v63 = vpop.eup %1957 }
 0x324   :  { %v390_v35 = vpop.permute.xlu0 %389  ;;  %v196_v0 = vsel %vm183_vm3, %v2192_v63, 0.0 }
 0x325   :  { %1815 = vmatmul.msk.f32.vlgmr.msrb.gmra.mxu3 %vm149_vm2, %v268_v3  ;;  %1821 = vmatmul.msk.f32.vlgmr.msrb.gmra.mxu0 %vm149_vm2, %v390_v35 }
 0x32d   :  { %1816 = vmatmul.msk.f32.gmra.mxu3 %vm149_vm2, %v270_v4  ;;  %1822 = vmatmul.msk.f32.gmra.mxu0 %vm149_vm2, %v392_v36 }
 0x335   :  { %1827 = vmatmul.msk.f32.vlgmr.msra.gmra.mxu3 %vm149_vm2, %v512_v34 }
 0x33d   :  { %1828 = vmatmul.msk.f32.gmra.mxu3 %vm149_vm2, %v514_v18 }
 0x3a0   :  { %v2178_v37 = vpop.f32.mrf.mxu3 }
 0x3a2   :  { %v422_v43 = vpop.f32.mrf.mxu0 }
 0x3a3   :  { %v423_v47 = vadd.f32 %v422_v43, %v2163_v19 }
 0x3a5   :  { %v428_v52 = vsel %vm183_vm3, %v423_v47, -inf }
 0x3a8   :  { %v300_v38 = vpop.f32.mrf.mxu3 }
 0x3a9   :  { %v301_v39 = vadd.f32 %v300_v38, %v2163_v19 }
 0x3aa   :  { %v425_v54 = vpop.f32.mrf.mxu0 }
 0x3ab   :  { %v306_v40 = vsel %vm183_vm3, %v301_v39, -inf  ;;  %v426_v57 = vadd.f32 %v425_v54, %v2149_v60 }
 0x3ac   :  { %307 = vmax.xlane.f32.xlu0 %v306_v40 }
 0x3ad   :  { %v431_v61 = vsel %vm183_vm3, %v426_v57, -inf }
 0x3b0   :  { %v303_v41 = vpop.f32.mrf.mxu3 }
 0x3b1   :  { %v304_v42 = vadd.f32 %v303_v41, %v2149_v60 }
 0x3b3   :  { %v309_v45 = vsel %vm183_vm3, %v304_v42, -inf }
 0x3b4   :  { %310 = vmax.xlane.f32.xlu1 %v309_v45 }
 0x3b8   :  { %v544_v48 = vpop.f32.mrf.mxu3 }
 0x3b9   :  { %v545_v50 = vadd.f32 %v544_v48, %v2163_v19 }
 0x3bb   :  { %v550_v53 = vsel %vm183_vm3, %v545_v50, -inf }
 0x3bc   :  { %429 = vmax.xlane.f32.xlu1 %v428_v52  ;;  %551 = vmax.xlane.f32.xlu0 %v550_v53 }
 0x3c0   :  { %v547_v58 = vpop.f32.mrf.mxu3 }
 0x3c1   :  { %v548_v59 = vadd.f32 %v547_v58, %v2149_v60 }
 0x3c3   :  { %v553_v62 = vsel %vm183_vm3, %v548_v59, -inf }
 0x3c4   :  { %432 = vmax.xlane.f32.xlu0 %v431_v61  ;;  %554 = vmax.xlane.f32.xlu2 %v553_v62 }
 0x3cc   :  { %197 = vadd.xlane.f32.xlu0 %v196_v0 }
 0x41f   :  { %v308_v2 = vpop.xlane.xlu0 %307 }
 0x420   :  { %v312_v3 = vsub.f32 %v301_v39, %v308_v2 }
 0x422   :  { %v314_v4 = vmul.f32 1.442695, %v312_v3 }
 0x424   :  { %1959 = vpow2.f32 %v314_v4 }
 0x427   :  { %v311_v5 = vpop.xlane.xlu1 %310 }
 0x428   :  { %v313_v6 = vsub.f32 %v304_v42, %v311_v5 }
 0x42a   :  { %v2196_v7 = vpop.eup %1959  ;;  %v316_v8 = vmul.f32 1.442695, %v313_v6 }
 0x42b   :  { %v318_v9 = vsel %vm183_vm3, %v2196_v7, 0.0 }
 0x42c   :  { %1961 = vpow2.f32 %v316_v8  ;;  %319 = vadd.xlane.f32.xlu1 %v318_v9 }
 0x42f   :  { %v430_v10 = vpop.xlane.xlu1 %429  ;;  %v552_v11 = vpop.xlane.xlu0 %551 }
 0x430   :  { %v434_v12 = vsub.f32 %v423_v47, %v430_v10  ;;  %v556_v13 = vsub.f32 %v545_v50, %v552_v11 }
 0x432   :  { %v2200_v14 = vpop.eup %1961  ;;  %v436_v15 = vmul.f32 1.442695, %v434_v12  ;;  %v558_v16 = vmul.f32 1.442695, %v556_v13 }
 0x433   :  { %v321_v17 = vsel %vm183_vm3, %v2200_v14, 0.0 }
 0x434   :  { %1963 = vpow2.f32 %v436_v15  ;;  %322 = vadd.xlane.f32.xlu2 %v321_v17 }
 0x435   :  { %1965 = vpow2.f32 %v558_v16 }
 0x437   :  { %v433_v18 = vpop.xlane.xlu0 %432  ;;  %v555_v20 = vpop.xlane.xlu2 %554 }
 0x438   :  { %v435_v21 = vsub.f32 %v426_v57, %v433_v18  ;;  %v557_v22 = vsub.f32 %v548_v59, %v555_v20 }
 0x43a   :  { %v2204_v23 = vpop.eup %1963  ;;  %v438_v24 = vmul.f32 1.442695, %v435_v21  ;;  %v560_v25 = vmul.f32 1.442695, %v557_v22 }
 0x43b   :  { %v2206_v26 = vpop.eup %1965  ;;  %v440_v27 = vsel %vm183_vm3, %v2204_v23, 0.0 }
 0x43c   :  { %1967 = vpow2.f32 %v438_v24  ;;  %v562_v28 = vsel %vm183_vm3, %v2206_v26, 0.0  ;;  %441 = vadd.xlane.f32.xlu0 %v440_v27 }
 0x43d   :  { %1969 = vpow2.f32 %v560_v25  ;;  %563 = vadd.xlane.f32.xlu1 %v562_v28 }
 0x43f   :  { %v198_v29 = vpop.xlane.xlu0 %197 }
 0x440   :  { %1971 = vrcp.f32 %v198_v29  ;;  %v213_v38 = vand.u32 2147483648, %v198_v29  ;;  %v211_v40 = vand.u32 2147483647, %v198_v29  ;;  %vm207_vm9 = vweird.f32 %v198_v29 }
 0x442   :  { %v2212_v30 = vpop.eup %1967  ;;  %v214_v42 = vor.u32 1.1754944e-38, %v213_v38  ;;  %vm212_vm11 = vcmp.eq.f32.partialorder %v211_v40, 8.507059e+37 }
 0x443   :  { %v2214_v31 = vpop.eup %1969  ;;  %v443_v32 = vsel %vm183_vm3, %v2212_v30, 0.0 }
 0x444   :  { %444 = vadd.xlane.f32.xlu0 %v443_v32  ;;  %v565_v33 = vsel %vm183_vm3, %v2214_v31, 0.0 }
 0x445   :  { %566 = vadd.xlane.f32.xlu1 %v565_v33 }
 0x446   :  { %v1972_v34 = vpop.eup %1971 }
 0x447   :  { %v203_v35 = vmul.f32 %v1972_v34, %v198_v29  ;;  %vm208_vm8 = vweird.f32 %v1972_v34 }
 0x448   :  { %vm209_vm10 = vmor %vm207_vm9, %vm208_vm8 }
 0x449   :  { %v204_v36 = vsub.f32 1.0, %v203_v35 }
 0x44b   :  { %v205_v39 = vmul.f32 %v1972_v34, %v204_v36 }
 0x44c   :  { %1902 = vrot.lane.b32.xlu2 %v2134_v55, %s2053_s9 }
 0x44d   :  { %v206_v41 = vadd.f32 %v1972_v34, %v205_v39 }
 0x44f   :  { %v210_v43 = vsel %vm209_vm10, %v1972_v34, %v206_v41 }
 0x450   :  { %v215_v45 = vsel %vm212_vm11, %v214_v42, %v210_v43 }
 0x451   :  { %v230_v46 = vmul.f32 %v2192_v63, %v215_v45 }
 0x453   :  { %1811 = vmatmul.msk.f32.vlgmr.msrb.gmra.mxu1 %vm183_vm3, %v230_v46 }
 0x458   :  { %1912 = vrot.lane.b32.xlu0 %v2134_v55, %s2054_s10 }
 0x45e   :  { %1907 = vrot.lane.b32.xlu1 %v2134_v55, %s2055_s11 }
 0x49f   :  { %v320_v47 = vpop.xlane.xlu1 %319 }
 0x4a0   :  { %1973 = vrcp.f32 %v320_v47  ;;  %v335_v54 = vand.u32 2147483648, %v320_v47  ;;  %vm329_vm13 = vweird.f32 %v320_v47  ;;  %v333_v58 = vand.u32 2147483647, %v320_v47 }
 0x4a2   :  { %v336_v0 = vor.u32 1.1754944e-38, %v335_v54  ;;  %vm334_vm15 = vcmp.eq.f32.partialorder %v333_v58, 8.507059e+37 }
 0x4a6   :  { %v1974_v48 = vpop.eup %1973 }
 0x4a7   :  { %v325_v50 = vmul.f32 %v1974_v48, %v320_v47  ;;  %v323_v51 = vpop.xlane.xlu2 %322  ;;  %vm330_vm12 = vweird.f32 %v1974_v48 }
 0x4a8   :  { %1975 = vrcp.f32 %v323_v51  ;;  %vm331_vm14 = vmor %vm329_vm13, %vm330_vm12  ;;  %vm343_vm5 = vweird.f32 %v323_v51  ;;  %v349_v6 = vand.u32 2147483648, %v323_v51  ;;  %v347_v11 = vand.u32 2147483647, %v323_v51 }
 0x4a9   :  { %v326_v52 = vsub.f32 1.0, %v325_v50 }
 0x4aa   :  { %v350_v16 = vor.u32 1.1754944e-38, %v349_v6  ;;  %vm348_vm7 = vcmp.eq.f32.partialorder %v347_v11, 8.507059e+37 }
 0x4ab   :  { %v327_v53 = vmul.f32 %v1974_v48, %v326_v52 }
 0x4ad   :  { %v328_v56 = vadd.f32 %v1974_v48, %v327_v53 }
 0x4ae   :  { %v1976_v57 = vpop.eup %1975 }
 0x4af   :  { %v339_v59 = vmul.f32 %v1976_v57, %v323_v51  ;;  %v442_v61 = vpop.xlane.xlu0 %441  ;;  %v1903_v62 = vpop.permute.xlu2 %1902  ;;  %v332_v55 = vsel %vm331_vm14, %v1974_v48, %v328_v56  ;;  %vm344_vm4 = vweird.f32 %v1976_v57 }
 0x4b0   :  { %v2228_v63 = vpop.xlane.xlu1 %563  ;;  %1977 = vrcp.f32 %v442_v61  ;;  %v1904_v3 = vunpack.i.l.bf16 %v1903_v62  ;;  %v337_v5 = vsel %vm334_vm15, %v336_v0, %v332_v55  ;;  %v1905_v8 = vunpack.i.h.bf16 %v1903_v62  ;;  %vm345_vm6 = vmor %vm343_vm5, %vm344_vm4 }
 0x4b1   :  { %v340_v2 = vsub.f32 1.0, %v339_v59  ;;  %1979 = vrcp.f32 %v2228_v63  ;;  %v352_v9 = vmul.f32 %v2196_v7, %v337_v5  ;;  %v457_v35 = vand.u32 2147483648, %v442_v61 }
 0x4b2   :  { %380 = vmatpush.msra.mxu2 %v1904_v3  ;;  %vm451_vm9 = vweird.f32 %v442_v61  ;;  %v455_v38 = vand.u32 2147483647, %v442_v61  ;;  %v579_v46 = vand.u32 2147483648, %v2228_v63  ;;  %vm573_vm13 = vweird.f32 %v2228_v63 }
 0x4b3   :  { %v341_v4 = vmul.f32 %v1976_v57, %v340_v2  ;;  %v458_v41 = vor.u32 1.1754944e-38, %v457_v35  ;;  %v577_v50 = vand.u32 2147483647, %v2228_v63 }
 0x4b4   :  { %381 = vmatpush.msra.mxu2 %v1905_v8  ;;  %vm456_vm12 = vcmp.eq.f32.partialorder %v455_v38, 8.507059e+37 }
 0x4b5   :  { %v342_v10 = vadd.f32 %v1976_v57, %v341_v4  ;;  %1817 = vmatmul.msk.f32.vlgmr.msra.gmra.mxu2 %vm183_vm3, %v352_v9 }
 0x4b6   :  { %v1978_v12 = vpop.eup %1977 }
 0x4b7   :  { %v2233_v13 = vpop.xlane.xlu0 %444  ;;  %v346_v15 = vsel %vm345_vm6, %v1976_v57, %v342_v10  ;;  %v447_v17 = vmul.f32 %v1978_v12, %v442_v61  ;;  %v1980_v21 = vpop.eup %1979  ;;  %vm452_vm8 = vweird.f32 %v1978_v12  ;;  %v580_v61 = vor.u32 1.1754944e-38, %v579_v46 }
 0x4b8   :  { %1981 = vrcp.f32 %v2233_v13  ;;  %v2236_v18 = vpop.xlane.xlu1 %566  ;;  %v351_v20 = vsel %vm348_vm7, %v350_v16, %v346_v15  ;;  %v569_v25 = vmul.f32 %v1980_v21, %v2228_v63  ;;  %vm453_vm10 = vmor %vm451_vm9, %vm452_vm8  ;;  %vm574_vm11 = vweird.f32 %v1980_v21 }
 0x4b9   :  { %v448_v7 = vsub.f32 1.0, %v447_v17  ;;  %1983 = vrcp.f32 %v2236_v18  ;;  %v353_v22 = vmul.f32 %v2200_v14, %v351_v20  ;;  %vm2250_vm15 = vmor %vm573_vm13, %vm574_vm11  ;;  %vm465_vm4 = vweird.f32 %v2233_v13  ;;  %v667_v20 = vld [vmem:[%s2720_s1 + $0x20] sm:$0xff] }
 0x4ba   :  { %v570_v29 = vsub.f32 1.0, %v569_v25  ;;  %v471_v53 = vand.u32 2147483648, %v2233_v13  ;;  %v469_v59 = vand.u32 2147483647, %v2233_v13  ;;  %vm578_vm6 = vcmp.eq.f32.partialorder %v577_v50, 8.507059e+37  ;;  %688 = vmatpush.msra.mxu0 %v667_v20 }
 0x4bb   :  { %v449_v27 = vmul.f32 %v1978_v12, %v448_v7  ;;  %vm587_vm9 = vweird.f32 %v2236_v18  ;;  %v591_v8 = vand.u32 2147483647, %v2236_v18  ;;  %v665_v7 = vld [vmem:[%s2720_s1 + $0x10] sm:$0xff] }
 0x4bc   :  { %v571_v36 = vmul.f32 %v1980_v21, %v570_v29  ;;  %v472_v55 = vor.u32 1.1754944e-38, %v471_v53  ;;  %vm470_vm7 = vcmp.eq.f32.partialorder %v469_v59, 8.507059e+37 }
 0x4bd   :  { %1818 = vmatmul.msk.f32.gmra.mxu2 %vm183_vm3, %v353_v22  ;;  %v450_v33 = vadd.f32 %v1978_v12, %v449_v27  ;;  %vm592_vm11 = vcmp.eq.f32.partialorder %v591_v8, 8.507059e+37  ;;  %v664_v22 = vld [vmem:[%s2720_s1 + $0x8] sm:$0xff] }
 0x4be   :  { %v1982_v24 = vpop.eup %1981  ;;  %v572_v42 = vadd.f32 %v1980_v21, %v571_v36 }
 0x4bf   :  { %v461_v28 = vmul.f32 %v1982_v24, %v2233_v13  ;;  %v2243_v32 = vpop.eup %1983  ;;  %v454_v39 = vsel %vm453_vm10, %v1978_v12, %v450_v33  ;;  %vm466_vm14 = vweird.f32 %v1982_v24 }
 0x4c0   :  { %v583_v14 = vmul.f32 %v2243_v32, %v2236_v18  ;;  %v459_v47 = vsel %vm456_vm12, %v458_v41, %v454_v39  ;;  %v576_v58 = vsel %vm2250_vm15, %v1980_v21, %v572_v42  ;;  %vm467_vm5 = vmor %vm465_vm4, %vm466_vm14  ;;  %vm588_vm8 = vweird.f32 %v2243_v32  ;;  %v666_v21 = vld [vmem:[%s2720_s1 + $0x18] sm:$0xff]  ;;  %v1937_v39 = vld [vmem:[%s2720_s1 + $0x28] ss:$0 sm:$0xff] }
 0x4c1   :  { %v462_v34 = vsub.f32 1.0, %v461_v28  ;;  %v474_v57 = vmul.f32 %v2204_v23, %v459_v47  ;;  %v581_v2 = vsel %vm578_vm6, %v580_v61, %v576_v58  ;;  %v593_v23 = vand.u32 2147483648, %v2236_v18  ;;  %vm589_vm10 = vmor %vm587_vm9, %vm588_vm8  ;;  %689 = vmatpush.msra.mxu0 %v666_v21  ;;  %v808_v21 = vld [vmem:[%s2720_s1 + $0x98] sm:$0xff] }
 0x4c2   :  { %v584_v43 = vsub.f32 1.0, %v583_v14  ;;  %v596_v6 = vmul.f32 %v2206_v26, %v581_v2  ;;  %vm661_vm12 = vcmask 195584   ;;  %v763_v2 = vld [vmem:[%s2721_s2 + $0x40] sm:$0xff] }
 0x4c3   :  { %v463_v40 = vmul.f32 %v1982_v24, %v462_v34  ;;  %v594_v11 = vor.u32 1.1754944e-38, %v593_v23  ;;  %690 = vmatpush.msra.mxu0 %v665_v7  ;;  %v761_v23 = vld [vmem:[%s2721_s2 + $0x30] sm:$0xff] }
 0x4c4   :  { %v585_v56 = vmul.f32 %v2243_v32, %v584_v43  ;;  %v1938_v7 = vld [vmem:[%s2720_s1 + $0x30] ss:$0 sm:$0xff] }
 0x4c5   :  { %v464_v51 = vadd.f32 %v1982_v24, %v463_v40  ;;  %691 = vmatpush.msra.mxu0 %v664_v22 }
 0x4c6   :  { %v586_v3 = vadd.f32 %v2243_v32, %v585_v56 }
 0x4c7   :  { %v468_v63 = vsel %vm467_vm5, %v1982_v24, %v464_v51 }
 0x4c8   :  { %v473_v5 = vsel %vm470_vm7, %v472_v55, %v468_v63  ;;  %v590_v10 = vsel %vm589_vm10, %v2243_v32, %v586_v3  ;;  %v762_v3 = vld [vmem:[%s2721_s2 + $0x38] sm:$0xff] }
 0x4c9   :  { %v475_v9 = vmul.f32 %v2212_v30, %v473_v5  ;;  %v595_v12 = vsel %vm592_vm11, %v594_v11, %v590_v10 }
 0x4ca   :  { %v1913_v45 = vpop.permute.xlu0 %1912  ;;  %v597_v13 = vmul.f32 %v2214_v31, %v595_v12  ;;  %v812_v12 = vld [vmem:[%s2720_s1 + $0xb8] sm:$0xff] }
 0x4cb   :  { %v1914_v48 = vunpack.i.l.bf16 %v1913_v45  ;;  %v1915_v54 = vunpack.i.h.bf16 %v1913_v45  ;;  %815 = vmatpush.msrb.mxu3 %v812_v12 }
 0x4cd   :  { %502 = vmatpush.msra.mxu1 %v1914_v48  ;;  %v2059_v48 = vmov 32.0  }
 0x4ce   :  { %1985 = vrcp.f32 %v2059_v48 }
 0x4cf   :  { %503 = vmatpush.msra.mxu1 %v1915_v54 }
 0x4d0   :  { %v1908_v62 = vpop.permute.xlu1 %1907  ;;  %1823 = vmatmul.msk.f32.vlgmr.msra.gmra.mxu1 %vm183_vm3, %v474_v57  ;;  %v261_v16 = vpop.f32.mrf.mxu1 }
 0x4d1   :  { %v1909_v0 = vunpack.i.l.bf16 %v1908_v62  ;;  %v1910_v4 = vunpack.i.h.bf16 %v1908_v62  ;;  %784 = vmatpush.msrb.mxu1 %v763_v2 }
 0x4d3   :  { %624 = vmatpush.msrb.mxu2 %v1909_v0  ;;  %785 = vmatpush.msrb.mxu1 %v762_v3 }
 0x4d4   :  { %v1986_v50 = vpop.eup %1985 }
 0x4d5   :  { %625 = vmatpush.msrb.mxu2 %v1910_v4  ;;  %v710_v51 = vmul.f32 32.0, %v1986_v50  ;;  %vm714_vm13 = vweird.f32 %v1986_v50  ;;  %786 = vmatpush.msrb.mxu1 %v761_v23  ;;  %v760_v4 = vld [vmem:[%s2721_s2 + $0x28] sm:$0xff] }
 0x4d6   :  { %1829 = vmatmul.msk.f32.vlgmr.msrb.gmra.mxu2 %vm183_vm3, %v596_v6 }
 0x4d7   :  { %v711_v52 = vsub.f32 1.0, %v710_v51  ;;  %787 = vmatpush.msrb.mxu1 %v760_v4  ;;  %v798_v51 = vld [vmem:[%s2720_s1 + $0x48] sm:$0xff] }
 0x4d8   :  { %1824 = vmatmul.msk.f32.gmra.mxu1 %vm183_vm3, %v475_v9 }
 0x4d9   :  { %v712_v53 = vmul.f32 %v1986_v50, %v711_v52  ;;  %v797_v52 = vld [vmem:[%s2720_s1 + $0x40] sm:$0xff] }
 0x4db   :  { %v713_v54 = vadd.f32 %v1986_v50, %v712_v53  ;;  %v1940_v53 = vld [vmem:[%s2721_s2 + $0x48] ss:$0 sm:$0xff] }
 0x4dd   :  { %v2308_v56 = vsel %vm714_vm13, %v1986_v50, %v713_v54  ;;  %v799_v50 = vld [vmem:[%s2720_s1 + $0x50] sm:$0xff] }
 0x4de   :  { %1830 = vmatmul.msk.f32.gmra.mxu2 %vm183_vm3, %v597_v13  ;;  %v811_v13 = vld [vmem:[%s2720_s1 + $0xb0] sm:$0xff] }
 0x4df   :  { %816 = vmatpush.msrb.mxu3 %v811_v13 }
 0x538   :  { %v383_v26 = vpop.f32.mrf.mxu2 }
 0x540   :  { %v386_v15 = vpop.f32.mrf.mxu2 }
 0x541   :  { %637 = vrot.lane.b32.xlu1 %v386_v15, %s2056_s12  ;;  %v810_v15 = vld [vmem:[%s2720_s1 + $0xa8] sm:$0xff] }
 0x542   :  { %817 = vmatpush.msrb.mxu3 %v810_v15 }
 0x54d   :  { %v505_v17 = vpop.f32.mrf.mxu1 }
 0x54e   :  { %643 = vrot.lane.b32.xlu2 %v505_v17, %s2057_s13 }
 0x555   :  { %v508_v30 = vpop.f32.mrf.mxu1 }
 0x556   :  { %645 = vrot.lane.b32.xlu0 %v508_v30, %s2057_s13  ;;  %635 = vrot.lane.b32.xlu2 %v383_v26, %s2056_s12 }
 0x559   :  { %v627_v18 = vpop.f32.mrf.mxu2 }
 0x55e   :  { %651 = vrot.lane.b32.xlu2 %v627_v18, %s2058_s14  ;;  %v809_v18 = vld [vmem:[%s2720_s1 + $0xa0] sm:$0xff] }
 0x55f   :  { %818 = vmatpush.msrb.mxu3 %v809_v18  ;;  %v892_v18 = vld [vmem:[%s2721_s2 + $0x50] sm:$0xff] }
 0x561   :  { %v630_v31 = vpop.f32.mrf.mxu2  ;;  %819 = vmatpush.msrb.mxu3 %v808_v21 }
 0x566   :  { %653 = vrot.lane.b32.xlu2 %v630_v31, %s2058_s14 }
 0x5a8   :  { %v644_v24 = vpop.permute.xlu2 %643 }
 0x5b0   :  { %v636_v25 = vpop.permute.xlu2 %635 }
 0x5b1   :  { %v657_v27 = vsel %vm149_vm2, %v261_v16, %v636_v25 }
 0x5b2   :  { %v659_v28 = vsel %vm183_vm3, %v657_v27, %v644_v24  ;;  %v807_v24 = vld [vmem:[%s2720_s1 + $0x90] sm:$0xff]  ;;  %v1939_v27 = vld [vmem:[%s2720_s1 + $0x38] ss:$0 sm:$0xff] }
 0x5b3   :  { %v638_v33 = vpop.permute.xlu1 %637  ;;  %820 = vmatpush.msrb.mxu3 %v807_v24 }
 0x5b4   :  { %v658_v34 = vsel %vm149_vm2, %v2178_v37, %v638_v33 }
 0x5b8   :  { %v652_v29 = vpop.permute.xlu2 %651 }
 0x5b9   :  { %v662_v32 = vsel %vm661_vm12, %v659_v28, %v652_v29  ;;  %v806_v28 = vld [vmem:[%s2720_s1 + $0x88] sm:$0xff] }
 0x5ba   :  { %1831 = vmatmul.msk.f32.vlgmr.msra.gmra.mxu0 %vm105_vm0, %v662_v32  ;;  %v805_v32 = vld [vmem:[%s2720_s1 + $0x80] sm:$0xff]  ;;  %821 = vmatpush.msrb.mxu3 %v806_v28 }
 0x5bc   :  { %822 = vmatpush.msrb.mxu3 %v805_v32 }
 0x5c0   :  { %v654_v36 = vpop.permute.xlu2 %653 }
 0x5c8   :  { %v646_v35 = vpop.permute.xlu0 %645 }
 0x5c9   :  { %v660_v38 = vsel %vm183_vm3, %v658_v34, %v646_v35  ;;  %v804_v35 = vld [vmem:[%s2720_s1 + $0x78] sm:$0xff] }
 0x5ca   :  { %v663_v14 = vsel %vm661_vm12, %v660_v38, %v654_v36  ;;  %v803_v38 = vld [vmem:[%s2720_s1 + $0x70] sm:$0xff]  ;;  %823 = vmatpush.msrb.mxu3 %v804_v35 }
 0x5cb   :  { %1832 = vmatmul.msk.f32.gmra.mxu0 %vm105_vm0, %v663_v14 }
 0x5cc   :  { %824 = vmatpush.msrb.mxu3 %v803_v38  ;;  %v1943_v38 = vld [vmem:[%s2720_s1 + $0xd0] ss:$0 sm:$0xff] }
 0x637   :  { %v693_v40 = vpop.f32.mrf.mxu0 }
 0x638   :  { %v694_v41 = vadd.f32 %v1937_v39, %v693_v40 }
 0x63a   :  { %v699_v42 = vadd.f32 %v694_v41, %v2118_v44  ;;  %v801_v41 = vld [vmem:[%s2720_s1 + $0x60] sm:$0xff] }
 0x63c   :  { %v703_v43 = vsel %vm105_vm0, %v699_v42, 0.0 }
 0x63d   :  { %704 = vadd.xlane.f32.xlu1 %v703_v43  ;;  %v800_v43 = vld [vmem:[%s2720_s1 + $0x58] sm:$0xff] }
 0x648   :  { %v696_v37 = vpop.f32.mrf.mxu0 }
 0x649   :  { %v697_v45 = vadd.f32 %v1937_v39, %v696_v37  ;;  %v802_v39 = vld [vmem:[%s2720_s1 + $0x68] sm:$0xff] }
 0x64a   :  { %825 = vmatpush.msrb.mxu3 %v802_v39 }
 0x64b   :  { %v700_v46 = vadd.f32 %v697_v45, %v2123_v49 }
 0x64c   :  { %826 = vmatpush.msrb.mxu3 %v801_v41 }
 0x64d   :  { %v706_v47 = vsel %vm105_vm0, %v700_v46, 0.0 }
 0x64e   :  { %707 = vadd.xlane.f32.xlu0 %v706_v47  ;;  %827 = vmatpush.msrb.mxu3 %v800_v43 }
 0x650   :  { %828 = vmatpush.msrb.mxu3 %v799_v50 }
 0x652   :  { %829 = vmatpush.msrb.mxu3 %v798_v51  ;;  %v1944_v51 = vld [vmem:[%s2721_s2 + $0x70] ss:$0 sm:$0xff] }
 0x654   :  { %830 = vmatpush.msrb.mxu3 %v797_v52 }
 0x6b0   :  { %v705_v44 = vpop.xlane.xlu1 %704 }
 0x6b1   :  { %v716_v57 = vmul.f32 %v2308_v56, %v705_v44 }
 0x6b3   :  { %v718_v58 = vsub.f32 %v699_v42, %v716_v57 }
 0x6b5   :  { %v720_v59 = vmul.f32 %v718_v58, %v718_v58 }
 0x6b7   :  { %v722_v49 = vsel %vm105_vm0, %v720_v59, 0.0 }
 0x6b8   :  { %723 = vadd.xlane.f32.xlu2 %v722_v49 }
 0x6c1   :  { %v708_v61 = vpop.xlane.xlu0 %707 }
 0x6c2   :  { %v717_v62 = vmul.f32 %v2308_v56, %v708_v61  ;;  %v1941_v61 = vld [vmem:[%s2720_s1 + $0xc0] ss:$0 sm:$0xff] }
 0x6c4   :  { %v2313_v63 = vsub.f32 %v700_v46, %v717_v62 }
 0x6c6   :  { %v721_v55 = vmul.f32 %v2313_v63, %v2313_v63 }
 0x6c8   :  { %v725_v0 = vsel %vm105_vm0, %v721_v55, 0.0 }
 0x6c9   :  { %726 = vadd.xlane.f32.xlu1 %v725_v0 }
 0x72b   :  { %v724_v5 = vpop.xlane.xlu2 %723 }
 0x72c   :  { %v728_v6 = vmul.f32 %v724_v5, %v2308_v56 }
 0x72e   :  { %v730_v8 = vadd.f32 1e-05, %v728_v6 }
 0x730   :  { %1987 = vrsqrt.f32 %v730_v8  ;;  %vm738_vm15 = vweird.f32 %v730_v8 }
 0x736   :  { %v1988_v9 = vpop.eup %1987 }
 0x737   :  { %v733_v10 = vmul.f32 %v1988_v9, %v730_v8  ;;  %vm739_vm14 = vweird.f32 %v1988_v9 }
 0x738   :  { %vm740_vm4 = vmor %vm738_vm15, %vm739_vm14 }
 0x739   :  { %v734_v11 = vmul.f32 %v1988_v9, %v733_v10 }
 0x73b   :  { %v735_v26 = vmul.f32 0.5, %v734_v11 }
 0x73c   :  { %v727_v16 = vpop.xlane.xlu1 %726 }
 0x73d   :  { %v736_v17 = vsub.f32 1.5, %v735_v26  ;;  %v729_v30 = vmul.f32 %v727_v16, %v2308_v56  ;;  %v895_v16 = vld [vmem:[%s2721_s2 + $0x68] sm:$0xff] }
 0x73e   :  { %916 = vmatpush.msra.mxu2 %v895_v16 }
 0x73f   :  { %v737_v31 = vmul.f32 %v1988_v9, %v736_v17  ;;  %v731_v20 = vadd.f32 1e-05, %v729_v30  ;;  %v894_v17 = vld [vmem:[%s2721_s2 + $0x60] sm:$0xff]  ;;  %v893_v30 = vld [vmem:[%s2721_s2 + $0x58] sm:$0xff] }
 0x740   :  { %917 = vmatpush.msra.mxu2 %v894_v17 }
 0x741   :  { %v741_v22 = vsel %vm740_vm4, %v1988_v9, %v737_v31  ;;  %1989 = vrsqrt.f32 %v731_v20  ;;  %vm748_vm6 = vweird.f32 %v731_v20 }
 0x742   :  { %v752_v25 = vmul.f32 %v741_v22, %v718_v58  ;;  %918 = vmatpush.msra.mxu2 %v893_v30 }
 0x744   :  { %v755_v29 = vmul.f32 %v1938_v7, %v752_v25  ;;  %919 = vmatpush.msra.mxu2 %v892_v18 }
 0x746   :  { %v758_v33 = vadd.f32 %v1939_v27, %v755_v29 }
 0x747   :  { %v1990_v34 = vpop.eup %1989 }
 0x748   :  { %v743_v36 = vmul.f32 %v1990_v34, %v731_v20  ;;  %1833 = vmatmul.msk.f32.vlgmr.msrb.gmra.mxu1 %vm105_vm0, %v758_v33  ;;  %vm749_vm5 = vweird.f32 %v1990_v34 }
 0x749   :  { %vm750_vm7 = vmor %vm748_vm6, %vm749_vm5 }
 0x74a   :  { %v744_v14 = vmul.f32 %v1990_v34, %v743_v36 }
 0x74c   :  { %v745_v40 = vmul.f32 0.5, %v744_v14 }
 0x74e   :  { %v746_v42 = vsub.f32 1.5, %v745_v40 }
 0x750   :  { %v747_v37 = vmul.f32 %v1990_v34, %v746_v42 }
 0x752   :  { %v751_v45 = vsel %vm750_vm7, %v1990_v34, %v747_v37  ;;  %v1942_v34 = vld [vmem:[%s2720_s1 + $0xc8] ss:$0 sm:$0xff] }
 0x753   :  { %v753_v46 = vmul.f32 %v751_v45, %v2313_v63 }
 0x755   :  { %v756_v47 = vmul.f32 %v1938_v7, %v753_v46 }
 0x757   :  { %v759_v48 = vadd.f32 %v1939_v27, %v756_v47 }
 0x759   :  { %1834 = vmatmul.msk.f32.gmra.mxu1 %vm105_vm0, %v759_v48 }
 0x7c5   :  { %v789_v54 = vpop.f32.mrf.mxu1 }
 0x7c6   :  { %v790_v44 = vadd.f32 %v1940_v53, %v789_v54 }
 0x7c8   :  { %v795_v57 = vmax.f32 %v790_v44, 0.0 }
 0x7ca   :  { %831 = vmatmul.f32.vlgmr.msrb.gmra.mxu3 %v795_v57 }
 0x7d6   :  { %v792_v58 = vpop.f32.mrf.mxu1 }
 0x7d7   :  { %v793_v59 = vadd.f32 %v1940_v53, %v792_v58 }
 0x7d9   :  { %v796_v49 = vmax.f32 %v793_v59, 0.0 }
 0x7db   :  { %834 = vmatmul.f32.gmra.mxu3 %v796_v49 }
 0x84d   :  { %v832_v62 = vpop.f32.mrf.mxu3 }
 0x84e   :  { %v833_v63 = vadd.f32 %v1941_v61, %v832_v62 }
 0x850   :  { %v838_v55 = vadd.f32 %v833_v63, %v758_v33 }
 0x852   :  { %v842_v0 = vsel %vm105_vm0, %v838_v55, 0.0 }
 0x853   :  { %843 = vadd.xlane.f32.xlu0 %v842_v0 }
 0x85e   :  { %v835_v2 = vpop.f32.mrf.mxu3 }
 0x85f   :  { %v836_v3 = vadd.f32 %v1941_v61, %v835_v2 }
 0x861   :  { %v839_v23 = vadd.f32 %v836_v3, %v759_v48 }
 0x863   :  { %v845_v4 = vsel %vm105_vm0, %v839_v23, 0.0 }
 0x864   :  { %846 = vadd.xlane.f32.xlu2 %v845_v4 }
 0x8c6   :  { %v844_v5 = vpop.xlane.xlu0 %843 }
 0x8c7   :  { %v848_v6 = vmul.f32 %v844_v5, %v2308_v56 }
 0x8c9   :  { %v850_v8 = vsub.f32 %v838_v55, %v848_v6 }
 0x8cb   :  { %v852_v9 = vmul.f32 %v850_v8, %v850_v8 }
 0x8cd   :  { %v854_v10 = vsel %vm105_vm0, %v852_v9, 0.0 }
 0x8ce   :  { %855 = vadd.xlane.f32.xlu1 %v854_v10 }
 0x8d7   :  { %v847_v11 = vpop.xlane.xlu2 %846 }
 0x8d8   :  { %v849_v12 = vmul.f32 %v847_v11, %v2308_v56 }
 0x8da   :  { %v851_v13 = vsub.f32 %v839_v23, %v849_v12 }
 0x8dc   :  { %v853_v26 = vmul.f32 %v851_v13, %v851_v13 }
 0x8de   :  { %v857_v15 = vsel %vm105_vm0, %v853_v26, 0.0 }
 0x8df   :  { %858 = vadd.xlane.f32.xlu0 %v857_v15 }
 0x941   :  { %v856_v31 = vpop.xlane.xlu1 %855 }
 0x942   :  { %v860_v20 = vmul.f32 %v856_v31, %v2308_v56 }
 0x944   :  { %v862_v21 = vadd.f32 1e-05, %v860_v20 }
 0x946   :  { %1991 = vrsqrt.f32 %v862_v21  ;;  %vm870_vm9 = vweird.f32 %v862_v21 }
 0x94c   :  { %v1992_v7 = vpop.eup %1991 }
 0x94d   :  { %v865_v22 = vmul.f32 %v1992_v7, %v862_v21  ;;  %vm871_vm8 = vweird.f32 %v1992_v7 }
 0x94e   :  { %vm872_vm10 = vmor %vm870_vm9, %vm871_vm8 }
 0x94f   :  { %v866_v24 = vmul.f32 %v1992_v7, %v865_v22 }
 0x951   :  { %v867_v25 = vmul.f32 0.5, %v866_v24 }
 0x952   :  { %v859_v27 = vpop.xlane.xlu0 %858 }
 0x953   :  { %v868_v28 = vsub.f32 1.5, %v867_v25  ;;  %v861_v29 = vmul.f32 %v859_v27, %v2308_v56 }
 0x955   :  { %v869_v32 = vmul.f32 %v1992_v7, %v868_v28  ;;  %v863_v33 = vadd.f32 1e-05, %v861_v29 }
 0x957   :  { %v873_v35 = vsel %vm872_vm10, %v1992_v7, %v869_v32  ;;  %1993 = vrsqrt.f32 %v863_v33  ;;  %vm880_vm13 = vweird.f32 %v863_v33 }
 0x958   :  { %v884_v36 = vmul.f32 %v873_v35, %v850_v8 }
 0x95a   :  { %v887_v14 = vmul.f32 %v1942_v34, %v884_v36 }
 0x95c   :  { %v2421_v39 = vadd.f32 %v1943_v38, %v887_v14 }
 0x95d   :  { %v1994_v40 = vpop.eup %1993 }
 0x95e   :  { %v875_v41 = vmul.f32 %v1994_v40, %v863_v33  ;;  %1835 = vmatmul.msk.f32.vlgmr.msra.gmra.mxu2 %vm105_vm0, %v2421_v39  ;;  %vm881_vm11 = vweird.f32 %v1994_v40 }
 0x95f   :  { %vm882_vm14 = vmor %vm880_vm13, %vm881_vm11 }
 0x960   :  { %v876_v42 = vmul.f32 %v1994_v40, %v875_v41 }
 0x962   :  { %v877_v43 = vmul.f32 0.5, %v876_v42 }
 0x964   :  { %v878_v37 = vsub.f32 1.5, %v877_v43 }
 0x966   :  { %v879_v45 = vmul.f32 %v1994_v40, %v878_v37 }
 0x968   :  { %v883_v46 = vsel %vm882_vm14, %v1994_v40, %v879_v45 }
 0x969   :  { %v885_v47 = vmul.f32 %v883_v46, %v851_v13 }
 0x96b   :  { %v888_v48 = vmul.f32 %v1942_v34, %v885_v47 }
 0x96d   :  { %v2425_v50 = vadd.f32 %v1943_v38, %v888_v48 }
 0x96f   :  { %1836 = vmatmul.msk.f32.gmra.mxu2 %vm105_vm0, %v2425_v50 }
 0x9e1   :  { %v921_v52 = vpop.f32.mrf.mxu2 }
 0x9e2   :  { %v2432_v53 = vadd.f32 %v1944_v51, %v921_v52 }
 0x9e4   :  { %931 = vrot.lane.b32.xlu1 %v2432_v53, %s2045_s28  ;;  %v2439_v44 = vmul.f32 0.35355338, %v2432_v53 }
 0x9ec   :  { %1055 = vrot.lane.b32.xlu1 %v2432_v53, %s2047_s30 }
 0x9f2   :  { %v924_v54 = vpop.f32.mrf.mxu2 }
 0x9f3   :  { %v925_v57 = vadd.f32 %v1944_v51, %v924_v54 }
 0x9f4   :  { %1051 = vrot.lane.b32.xlu1 %v2439_v44, %s2048_s4 }
 0x9f5   :  { %1057 = vrot.lane.b32.xlu0 %v925_v57, %s2047_s30  ;;  %933 = vrot.lane.b32.xlu2 %v925_v57, %s2045_s28  ;;  %v2446_v58 = vpack.i.bf16 %v2432_v53, %v925_v57  ;;  %v928_v59 = vmul.f32 0.35355338, %v925_v57 }
 0x9fc   :  { %1917 = vrot.lane.b32.xlu1 %v2446_v58, %s2046_s29 }
 0x9fd   :  { %1053 = vrot.lane.b32.xlu0 %v928_v59, %s2048_s4 }
 0xa04   :  { %1179 = vrot.lane.b32.xlu1 %v925_v57, %s2050_s6 }
 0xa0c   :  { %1177 = vrot.lane.b32.xlu1 %v2432_v53, %s2050_s6 }
 0xa14   :  { %1295 = vrot.lane.b32.xlu1 %v2439_v44, %s2052_s8 }
 0xa1c   :  { %1297 = vrot.lane.b32.xlu1 %v928_v59, %s2052_s8 }
 0xa4f   :  { %v934_v49 = vpop.permute.xlu2 %933 }
 0xa50   :  { %1837 = vmatpush.xpose.msk.msrb.mxu0 %vm149_vm2, %v934_v49 }
 0xa56   :  { %v932_v61 = vpop.permute.xlu1 %931 }
 0xa57   :  { %1838 = vmatpush.xpose.msk.msrb.mxu0 %vm149_vm2, %v932_v61 }
 0xa5a   :  { %1839 = vmatmul.msk.f32.vlgmr.msrb.gmra.mxu0 %vm149_vm2, %v2439_v44 }
 0xa5e   :  { %v1056_v62 = vpop.permute.xlu1 %1055 }
 0xa62   :  { %1840 = vmatmul.msk.f32.gmra.mxu0 %vm149_vm2, %v928_v59 }
 0xa66   :  { %v1052_v63 = vpop.permute.xlu1 %1051 }
 0xa67   :  { %v1058_v55 = vpop.permute.xlu0 %1057 }
 0xa68   :  { %1843 = vmatpush.xpose.msk.msrb.mxu2 %vm149_vm2, %v1058_v55 }
 0xa6c   :  { %1844 = vmatpush.xpose.msk.msrb.mxu2 %vm149_vm2, %v1056_v62 }
 0xa6e   :  { %v1918_v0 = vpop.permute.xlu1 %1917 }
 0xa6f   :  { %v1919_v2 = vunpack.i.l.bf16 %v1918_v0  ;;  %1845 = vmatmul.msk.f32.vlgmr.msrb.gmra.mxu2 %vm149_vm2, %v1052_v63  ;;  %v1920_v3 = vunpack.i.h.bf16 %v1918_v0  ;;  %v1054_v23 = vpop.permute.xlu0 %1053 }
 0xa71   :  { %1042 = vmatpush.msra.mxu1 %v1919_v2 }
 0xa73   :  { %1043 = vmatpush.msra.mxu1 %v1920_v3 }
 0xa76   :  { %v1180_v4 = vpop.permute.xlu1 %1179 }
 0xa77   :  { %1846 = vmatmul.msk.f32.gmra.mxu2 %vm149_vm2, %v1054_v23  ;;  %1849 = vmatpush.xpose.msk.msrb.mxu1 %vm149_vm2, %v1180_v4 }
 0xa7e   :  { %v1178_v5 = vpop.permute.xlu1 %1177 }
 0xa7f   :  { %1850 = vmatpush.xpose.msk.msrb.mxu1 %vm149_vm2, %v1178_v5 }
 0xad7   :  { %v962_v6 = vpop.f32.mrf.mxu0 }
 0xad8   :  { %v963_v8 = vadd.f32 %v962_v6, %v2163_v19 }
 0xada   :  { %v968_v9 = vsel %vm183_vm3, %v963_v8, -inf }
 0xadb   :  { %969 = vmax.xlane.f32.xlu0 %v968_v9 }
 0xadf   :  { %v965_v10 = vpop.f32.mrf.mxu0 }
 0xae0   :  { %v966_v11 = vadd.f32 %v965_v10, %v2149_v60 }
 0xae2   :  { %v971_v12 = vsel %vm183_vm3, %v966_v11, -inf }
 0xae3   :  { %972 = vmax.xlane.f32.xlu0 %v971_v12 }
 0xaf2   :  { %v1084_v13 = vpop.f32.mrf.mxu2 }
 0xaf3   :  { %v1085_v28 = vadd.f32 %v1084_v13, %v2163_v19 }
 0xaf5   :  { %v1090_v29 = vsel %vm183_vm3, %v1085_v28, -inf }
 0xaf7   :  { %1301 = vrot.lane.b32.xlu0 %v925_v57, %s2049_s5 }
 0xafa   :  { %v1087_v26 = vpop.f32.mrf.mxu2 }
 0xafb   :  { %v2474_v15 = vadd.f32 %v1087_v26, %v2149_v60 }
 0xafd   :  { %v1093_v16 = vsel %vm183_vm3, %v2474_v15, -inf }
 0xafe   :  { %1094 = vmax.xlane.f32.xlu1 %v1093_v16 }
 0xb4e   :  { %v970_v17 = vpop.xlane.xlu0 %969 }
 0xb4f   :  { %v974_v30 = vsub.f32 %v963_v8, %v970_v17 }
 0xb51   :  { %v976_v18 = vmul.f32 1.442695, %v974_v30 }
 0xb53   :  { %1995 = vpow2.f32 %v976_v18 }
 0xb56   :  { %v973_v31 = vpop.xlane.xlu0 %972 }
 0xb57   :  { %v975_v20 = vsub.f32 %v966_v11, %v973_v31 }
 0xb59   :  { %v1996_v21 = vpop.eup %1995  ;;  %v978_v7 = vmul.f32 1.442695, %v975_v20 }
 0xb5a   :  { %v980_v22 = vsel %vm183_vm3, %v1996_v21, 0.0 }
 0xb5b   :  { %1997 = vpow2.f32 %v978_v7  ;;  %981 = vadd.xlane.f32.xlu0 %v980_v22 }
 0xb61   :  { %v1998_v24 = vpop.eup %1997 }
 0xb62   :  { %v983_v25 = vsel %vm183_vm3, %v1998_v24, 0.0 }
 0xb63   :  { %984 = vadd.xlane.f32.xlu2 %v983_v25 }
 0xb69   :  { %v1302_v27 = vpop.permute.xlu0 %1301 }
 0xb6a   :  { %1855 = vmatpush.xpose.msk.msra.mxu2 %vm149_vm2, %v1302_v27 }
 0xb6f   :  { %1299 = vrot.lane.b32.xlu0 %v2432_v53, %s2049_s5  ;;  %v1296_v53 = vpop.permute.xlu1 %1295 }
 0xb77   :  { %1175 = vrot.lane.b32.xlu0 %v928_v59, %s2051_s7  ;;  %v1298_v63 = vpop.permute.xlu1 %1297 }
 0xb7b   :  { %1173 = vrot.lane.b32.xlu2 %v2439_v44, %s2051_s7 }
 0xb7f   :  { %v1095_v10 = vpop.xlane.xlu1 %1094 }
 0xb80   :  { %v1097_v26 = vsub.f32 %v2474_v15, %v1095_v10 }
 0xb82   :  { %v1100_v18 = vmul.f32 1.442695, %v1097_v26 }
 0xba1   :  { %1091 = vmax.xlane.f32.xlu0 %v1090_v29 }
 0xbce   :  { %v982_v32 = vpop.xlane.xlu0 %981 }
 0xbcf   :  { %1999 = vrcp.f32 %v982_v32  ;;  %v997_v38 = vand.u32 2147483648, %v982_v32  ;;  %v995_v40 = vand.u32 2147483647, %v982_v32  ;;  %vm991_vm4 = vweird.f32 %v982_v32 }
 0xbd1   :  { %v998_v43 = vor.u32 1.1754944e-38, %v997_v38  ;;  %vm996_vm6 = vcmp.eq.f32.partialorder %v995_v40, 8.507059e+37 }
 0xbd5   :  { %v2000_v33 = vpop.eup %1999 }
 0xbd6   :  { %v987_v34 = vmul.f32 %v2000_v33, %v982_v32  ;;  %v985_v35 = vpop.xlane.xlu2 %984  ;;  %vm992_vm15 = vweird.f32 %v2000_v33 }
 0xbd7   :  { %2001 = vrcp.f32 %v985_v35  ;;  %vm993_vm5 = vmor %vm991_vm4, %vm992_vm15  ;;  %v1011_v51 = vand.u32 2147483648, %v985_v35  ;;  %v1009_v44 = vand.u32 2147483647, %v985_v35  ;;  %vm1005_vm8 = vweird.f32 %v985_v35 }
 0xbd8   :  { %v988_v36 = vsub.f32 1.0, %v987_v34 }
 0xbd9   :  { %v1012_v59 = vor.u32 1.1754944e-38, %v1011_v51  ;;  %vm1010_vm10 = vcmp.eq.f32.partialorder %v1009_v44, 8.507059e+37 }
 0xbda   :  { %v989_v14 = vmul.f32 %v2000_v33, %v988_v36 }
 0xbdc   :  { %v990_v41 = vadd.f32 %v2000_v33, %v989_v14 }
 0xbdd   :  { %v2002_v42 = vpop.eup %2001 }
 0xbde   :  { %v994_v37 = vsel %vm993_vm5, %v2000_v33, %v990_v41  ;;  %v1001_v45 = vmul.f32 %v2002_v42, %v985_v35  ;;  %vm1006_vm7 = vweird.f32 %v2002_v42  ;;  %v1174_v55 = vpop.permute.xlu2 %1173 }
 0xbdf   :  { %v999_v46 = vsel %vm996_vm6, %v998_v43, %v994_v37  ;;  %vm1007_vm9 = vmor %vm1005_vm8, %vm1006_vm7 }
 0xbe0   :  { %v1002_v47 = vsub.f32 1.0, %v1001_v45  ;;  %v1014_v48 = vmul.f32 %v1996_v21, %v999_v46 }
 0xbe1   :  { %v1300_v52 = vpop.permute.xlu0 %1299 }
 0xbe2   :  { %v1003_v54 = vmul.f32 %v2002_v42, %v1002_v47  ;;  %1841 = vmatmul.msk.f32.vlgmr.msra.gmra.mxu1 %vm183_vm3, %v1014_v48  ;;  %1856 = vmatpush.xpose.msk.msra.mxu2 %vm149_vm2, %v1300_v52 }
 0xbe4   :  { %v1004_v57 = vadd.f32 %v2002_v42, %v1003_v54 }
 0xbe5   :  { %1857 = vmatmul.msk.f32.vlgmr.msra.gmra.mxu2 %vm149_vm2, %v1296_v53 }
 0xbe6   :  { %v1008_v49 = vsel %vm1007_vm9, %v2002_v42, %v1004_v57 }
 0xbe7   :  { %v1013_v61 = vsel %vm1010_vm10, %v1012_v59, %v1008_v49 }
 0xbe8   :  { %v1015_v62 = vmul.f32 %v1998_v24, %v1013_v61 }
 0xbe9   :  { %v1176_v0 = vpop.permute.xlu0 %1175 }
 0xbea   :  { %1842 = vmatmul.msk.f32.gmra.mxu1 %vm183_vm3, %v1015_v62 }
 0xbed   :  { %1858 = vmatmul.msk.f32.gmra.mxu2 %vm149_vm2, %v1298_v63 }
 0xbf2   :  { %1851 = vmatmul.msk.f32.vlgmr.msrb.gmra.mxu1 %vm149_vm2, %v1174_v55 }
 0xbfa   :  { %1852 = vmatmul.msk.f32.gmra.mxu1 %vm149_vm2, %v1176_v0 }
 0xc14   :  { %v1092_v3 = vpop.xlane.xlu0 %1091 }
 0xc15   :  { %v1096_v5 = vsub.f32 %v1085_v28, %v1092_v3 }
 0xc17   :  { %v1098_v9 = vmul.f32 1.442695, %v1096_v5 }
 0xc19   :  { %2003 = vpow2.f32 %v1098_v9 }
 0xc1a   :  { %2005 = vpow2.f32 %v1100_v18 }
 0xc1f   :  { %v2506_v31 = vpop.eup %2003 }
 0xc20   :  { %v1102_v15 = vsel %vm183_vm3, %v2506_v31, 0.0  ;;  %v2512_v7 = vpop.eup %2005 }
 0xc21   :  { %v1105_v22 = vsel %vm183_vm3, %v2512_v7, 0.0 }
 0xc5f   :  { %v2495_v2 = vpop.f32.mrf.mxu1 }
 0xc67   :  { %v2497_v23 = vpop.f32.mrf.mxu1 }
 0xc68   :  { %v1328_v4 = vpop.f32.mrf.mxu2 }
 0xc69   :  { %v1329_v6 = vadd.f32 %v1328_v4, %v2163_v19 }
 0xc6b   :  { %v1334_v8 = vsel %vm183_vm3, %v1329_v6, -inf }
 0xc6c   :  { %1335 = vmax.xlane.f32.xlu0 %v1334_v8 }
 0xc6f   :  { %v1206_v11 = vpop.f32.mrf.mxu1 }
 0xc70   :  { %v1207_v12 = vadd.f32 %v1206_v11, %v2163_v19  ;;  %v1331_v13 = vpop.f32.mrf.mxu2 }
 0xc71   :  { %v1332_v16 = vadd.f32 %v1331_v13, %v2149_v60 }
 0xc72   :  { %v1212_v17 = vsel %vm183_vm3, %v1207_v12, -inf }
 0xc73   :  { %1213 = vmax.xlane.f32.xlu2 %v1212_v17  ;;  %v1337_v30 = vsel %vm183_vm3, %v1332_v16, -inf }
 0xc74   :  { %1338 = vmax.xlane.f32.xlu0 %v1337_v30 }
 0xc77   :  { %v1209_v20 = vpop.f32.mrf.mxu1 }
 0xc78   :  { %v1210_v21 = vadd.f32 %v1209_v20, %v2149_v60 }
 0xc7a   :  { %v1215_v19 = vsel %vm183_vm3, %v1210_v21, -inf }
 0xc7b   :  { %1216 = vmax.xlane.f32.xlu1 %v1215_v19  ;;  %1103 = vadd.xlane.f32.xlu2 %v1102_v15 }
 0xc83   :  { %1106 = vadd.xlane.f32.xlu1 %v1105_v22 }
 0xc9c   :  { %1922 = vrot.lane.b32.xlu1 %v2446_v58, %s2053_s9 }
 0xcdf   :  { %v1336_v24 = vpop.xlane.xlu0 %1335 }
 0xce0   :  { %v1340_v25 = vsub.f32 %v1329_v6, %v1336_v24 }
 0xce2   :  { %v1342_v60 = vmul.f32 1.442695, %v1340_v25 }
 0xce4   :  { %2007 = vpow2.f32 %v1342_v60 }
 0xce6   :  { %v1214_v27 = vpop.xlane.xlu2 %1213 }
 0xce7   :  { %v1218_v28 = vsub.f32 %v1207_v12, %v1214_v27  ;;  %v1339_v29 = vpop.xlane.xlu0 %1338 }
 0xce8   :  { %v1341_v32 = vsub.f32 %v1332_v16, %v1339_v29 }
 0xce9   :  { %v1220_v33 = vmul.f32 1.442695, %v1218_v28 }
 0xcea   :  { %v2518_v34 = vpop.eup %2007  ;;  %v1344_v35 = vmul.f32 1.442695, %v1341_v32 }
 0xceb   :  { %2009 = vpow2.f32 %v1220_v33  ;;  %v1346_v36 = vsel %vm183_vm3, %v2518_v34, 0.0 }
 0xcec   :  { %2011 = vpow2.f32 %v1344_v35  ;;  %1347 = vadd.xlane.f32.xlu2 %v1346_v36 }
 0xcee   :  { %v1217_v38 = vpop.xlane.xlu1 %1216  ;;  %v1104_v40 = vpop.xlane.xlu2 %1103 }
 0xcef   :  { %v1219_v14 = vsub.f32 %v1210_v21, %v1217_v38  ;;  %2013 = vrcp.f32 %v1104_v40  ;;  %v1119_v61 = vand.u32 2147483648, %v1104_v40  ;;  %vm1113_vm13 = vweird.f32 %v1104_v40 }
 0xcf0   :  { %v1117_v62 = vand.u32 2147483647, %v1104_v40 }
 0xcf1   :  { %v2522_v41 = vpop.eup %2009  ;;  %v1222_v42 = vmul.f32 1.442695, %v1219_v14  ;;  %v1120_v0 = vor.u32 1.1754944e-38, %v1119_v61 }
 0xcf2   :  { %v2524_v43 = vpop.eup %2011  ;;  %v1224_v37 = vsel %vm183_vm3, %v2522_v41, 0.0  ;;  %vm1118_vm15 = vcmp.eq.f32.partialorder %v1117_v62, 8.507059e+37 }
 0xcf3   :  { %2015 = vpow2.f32 %v1222_v42  ;;  %1225 = vadd.xlane.f32.xlu0 %v1224_v37  ;;  %v1349_v45 = vsel %vm183_vm3, %v2524_v43, 0.0 }
 0xcf4   :  { %1350 = vadd.xlane.f32.xlu2 %v1349_v45 }
 0xcf5   :  { %v2014_v46 = vpop.eup %2013 }
 0xcf6   :  { %v1107_v47 = vpop.xlane.xlu1 %1106  ;;  %v1109_v52 = vmul.f32 %v2014_v46, %v1104_v40  ;;  %vm1114_vm11 = vweird.f32 %v2014_v46 }
 0xcf7   :  { %2017 = vrcp.f32 %v1107_v47  ;;  %vm1115_vm14 = vmor %vm1113_vm13, %vm1114_vm11  ;;  %v1133_v8 = vand.u32 2147483648, %v1107_v47  ;;  %vm1127_vm5 = vweird.f32 %v1107_v47  ;;  %v1131_v11 = vand.u32 2147483647, %v1107_v47 }
 0xcf8   :  { %v1110_v53 = vsub.f32 1.0, %v1109_v52 }
 0xcf9   :  { %v2530_v48 = vpop.eup %2015  ;;  %v1134_v13 = vor.u32 1.1754944e-38, %v1133_v8  ;;  %vm1132_vm7 = vcmp.eq.f32.partialorder %v1131_v11, 8.507059e+37 }
 0xcfa   :  { %v1227_v51 = vsel %vm183_vm3, %v2530_v48, 0.0  ;;  %v1111_v44 = vmul.f32 %v2014_v46, %v1110_v53 }
 0xcfb   :  { %1228 = vadd.xlane.f32.xlu0 %v1227_v51 }
 0xcfc   :  { %v1112_v59 = vadd.f32 %v2014_v46, %v1111_v44 }
 0xcfd   :  { %v2018_v54 = vpop.eup %2017 }
 0xcfe   :  { %v1123_v57 = vmul.f32 %v2018_v54, %v1107_v47  ;;  %v1116_v63 = vsel %vm1115_vm14, %v2014_v46, %v1112_v59  ;;  %vm1128_vm4 = vweird.f32 %v2018_v54 }
 0xcff   :  { %v1121_v4 = vsel %vm1118_vm15, %v1120_v0, %v1116_v63  ;;  %vm1129_vm6 = vmor %vm1127_vm5, %vm1128_vm4 }
 0xd00   :  { %v1124_v49 = vsub.f32 1.0, %v1123_v57  ;;  %v1136_v10 = vmul.f32 %v2506_v31, %v1121_v4 }
 0xd02   :  { %v1125_v55 = vmul.f32 %v2018_v54, %v1124_v49 }
 0xd04   :  { %v1126_v6 = vadd.f32 %v2018_v54, %v1125_v55 }
 0xd06   :  { %v1130_v12 = vsel %vm1129_vm6, %v2018_v54, %v1126_v6 }
 0xd07   :  { %v1135_v26 = vsel %vm1132_vm7, %v1134_v13, %v1130_v12 }
 0xd08   :  { %v1137_v16 = vmul.f32 %v2512_v7, %v1135_v26 }
 0xd0c   :  { %1932 = vrot.lane.b32.xlu2 %v2446_v58, %s2055_s11 }
 0xd0e   :  { %v1923_v3 = vpop.permute.xlu1 %1922 }
 0xd0f   :  { %v1924_v5 = vunpack.i.l.bf16 %v1923_v3  ;;  %1927 = vrot.lane.b32.xlu0 %v2446_v58, %s2054_s10  ;;  %v1925_v9 = vunpack.i.h.bf16 %v1923_v3 }
 0xd11   :  { %1164 = vmatpush.msra.mxu0 %v1924_v5 }
 0xd13   :  { %1165 = vmatpush.msra.mxu0 %v1925_v9 }
 0xd14   :  { %1847 = vmatmul.msk.f32.vlgmr.msra.gmra.mxu0 %vm183_vm3, %v1136_v10 }
 0xd1c   :  { %1848 = vmatmul.msk.f32.gmra.mxu0 %vm183_vm3, %v1137_v16 }
 0xd5f   :  { %v1348_v58 = vpop.xlane.xlu2 %1347 }
 0xd60   :  { %2019 = vrcp.f32 %v1348_v58  ;;  %v1363_v21 = vand.u32 2147483648, %v1348_v58  ;;  %v1361_v15 = vand.u32 2147483647, %v1348_v58  ;;  %vm1357_vm9 = vweird.f32 %v1348_v58 }
 0xd62   :  { %v1364_v7 = vor.u32 1.1754944e-38, %v1363_v21  ;;  %vm1362_vm11 = vcmp.eq.f32.partialorder %v1361_v15, 8.507059e+37 }
 0xd66   :  { %v2020_v17 = vpop.eup %2019  ;;  %v1226_v30 = vpop.xlane.xlu0 %1225 }
 0xd67   :  { %v1353_v18 = vmul.f32 %v2020_v17, %v1348_v58  ;;  %2021 = vrcp.f32 %v1226_v30  ;;  %v1351_v31 = vpop.xlane.xlu2 %1350  ;;  %vm1358_vm8 = vweird.f32 %v2020_v17  ;;  %v1241_v49 = vand.u32 2147483648, %v1226_v30 }
 0xd68   :  { %2023 = vrcp.f32 %v1351_v31  ;;  %vm1359_vm10 = vmor %vm1357_vm9, %vm1358_vm8  ;;  %v1377_v38 = vand.u32 2147483648, %v1351_v31  ;;  %v1375_v45 = vand.u32 2147483647, %v1351_v31  ;;  %vm1371_vm14 = vweird.f32 %v1351_v31 }
 0xd69   :  { %v1354_v20 = vsub.f32 1.0, %v1353_v18  ;;  %vm1235_vm6 = vweird.f32 %v1226_v30  ;;  %v1239_v61 = vand.u32 2147483647, %v1226_v30  ;;  %v1242_v55 = vor.u32 1.1754944e-38, %v1241_v49  ;;  %v1449_v18 = vld [vmem:[%s2720_s1 + $0xe8] sm:$0xff]  ;;  %v1536_v49 = vld [vmem:[%s2721_s2 + $0x78] sm:$0xff] }
 0xd6a   :  { %v1378_v52 = vor.u32 1.1754944e-38, %v1377_v38  ;;  %vm1376_vm4 = vcmp.eq.f32.partialorder %v1375_v45, 8.507059e+37 }
 0xd6b   :  { %v1355_v19 = vmul.f32 %v2020_v17, %v1354_v20  ;;  %vm1240_vm8 = vcmp.eq.f32.partialorder %v1239_v61, 8.507059e+37  ;;  %v1447_v20 = vld [vmem:[%s2720_s1 + $0xd8] sm:$0xff] }
 0xd6d   :  { %v2022_v22 = vpop.eup %2021  ;;  %v1356_v24 = vadd.f32 %v2020_v17, %v1355_v19 }
 0xd6e   :  { %v2024_v25 = vpop.eup %2023  ;;  %v1229_v60 = vpop.xlane.xlu0 %1228  ;;  %v1231_v28 = vmul.f32 %v2022_v22, %v1226_v30  ;;  %vm1236_vm5 = vweird.f32 %v2022_v22 }
 0xd6f   :  { %v1360_v27 = vsel %vm1359_vm10, %v2020_v17, %v1356_v24  ;;  %v1367_v29 = vmul.f32 %v2024_v25, %v1351_v31  ;;  %2025 = vrcp.f32 %v1229_v60  ;;  %v1933_v32 = vpop.permute.xlu2 %1932  ;;  %vm1372_vm13 = vweird.f32 %v2024_v25  ;;  %vm1237_vm7 = vmor %vm1235_vm6, %vm1236_vm5  ;;  %v1448_v31 = vld [vmem:[%s2720_s1 + $0xe0] sm:$0xff] }
 0xd70   :  { %v1365_v33 = vsel %vm1362_vm11, %v1364_v7, %v1360_v27  ;;  %v1934_v36 = vunpack.i.l.bf16 %v1933_v32  ;;  %v1232_v14 = vsub.f32 1.0, %v1231_v28  ;;  %v1935_v42 = vunpack.i.h.bf16 %v1933_v32  ;;  %vm1373_vm15 = vmor %vm1371_vm14, %vm1372_vm13 }
 0xd71   :  { %v1368_v35 = vsub.f32 1.0, %v1367_v29  ;;  %v1380_v37 = vmul.f32 %v2518_v34, %v1365_v33  ;;  %v1255_v6 = vand.u32 2147483648, %v1229_v60  ;;  %vm1249_vm10 = vweird.f32 %v1229_v60 }
 0xd72   :  { %1408 = vmatpush.msrb.mxu0 %v1934_v36  ;;  %v1233_v51 = vmul.f32 %v2022_v22, %v1232_v14  ;;  %v1253_v9 = vand.u32 2147483647, %v1229_v60 }
 0xd73   :  { %v1369_v40 = vmul.f32 %v2024_v25, %v1368_v35  ;;  %v1256_v11 = vor.u32 1.1754944e-38, %v1255_v6 }
 0xd74   :  { %1409 = vmatpush.msrb.mxu0 %v1935_v42  ;;  %v1234_v57 = vadd.f32 %v2022_v22, %v1233_v51  ;;  %vm1254_vm13 = vcmp.eq.f32.partialorder %v1253_v9, 8.507059e+37 }
 0xd75   :  { %v2026_v46 = vpop.eup %2025  ;;  %v1370_v47 = vadd.f32 %v2024_v25, %v1369_v40  ;;  %1859 = vmatmul.msk.f32.vlgmr.msrb.gmra.mxu0 %vm183_vm3, %v1380_v37 }
 0xd76   :  { %v1245_v53 = vmul.f32 %v2026_v46, %v1229_v60  ;;  %v1238_v62 = vsel %vm1237_vm7, %v2022_v22, %v1234_v57  ;;  %vm1250_vm9 = vweird.f32 %v2026_v46  ;;  %v1538_v57 = vld [vmem:[%s2721_s2 + $0x88] sm:$0xff] }
 0xd77   :  { %v1374_v54 = vsel %vm1373_vm15, %v2024_v25, %v1370_v47  ;;  %v1243_v3 = vsel %vm1240_vm8, %v1242_v55, %v1238_v62  ;;  %vm1251_vm11 = vmor %vm1249_vm10, %vm1250_vm9  ;;  %v1587_v55 = vld [vmem:[%s2720_s1 + $0x180] sm:$0xff] }
 0xd78   :  { %v1379_v44 = vsel %vm1376_vm4, %v1378_v52, %v1374_v54  ;;  %v1246_v59 = vsub.f32 1.0, %v1245_v53 }
 0xd79   :  { %v1381_v34 = vmul.f32 %v2524_v43, %v1379_v44  ;;  %v1258_v43 = vmul.f32 %v2522_v41, %v1243_v3  ;;  %v1539_v44 = vld [vmem:[%s2721_s2 + $0x90] sm:$0xff] }
 0xd7a   :  { %v1247_v63 = vmul.f32 %v2026_v46, %v1246_v59  ;;  %v1537_v59 = vld [vmem:[%s2721_s2 + $0x80] sm:$0xff] }
 0xd7c   :  { %v1248_v5 = vadd.f32 %v2026_v46, %v1247_v63  ;;  %v1588_v63 = vld [vmem:[%s2720_s1 + $0x188] sm:$0xff] }
 0xd7d   :  { %1860 = vmatmul.msk.f32.gmra.mxu0 %vm183_vm3, %v1381_v34  ;;  %1591 = vmatpush.msrb.mxu2 %v1588_v63 }
 0xd7e   :  { %v1252_v10 = vsel %vm1251_vm11, %v2026_v46, %v1248_v5  ;;  %v1585_v5 = vld [vmem:[%s2720_s1 + $0x170] sm:$0xff] }
 0xd7f   :  { %v1257_v12 = vsel %vm1254_vm13, %v1256_v11, %v1252_v10  ;;  %1592 = vmatpush.msrb.mxu2 %v1587_v55  ;;  %v1583_v10 = vld [vmem:[%s2720_s1 + $0x160] sm:$0xff]  ;;  %vm1738_vm13 = vcmask 779904  }
 0xd80   :  { %v1259_v13 = vmul.f32 %v2530_v48, %v1257_v12  ;;  %v1450_v48 = vld [vmem:[%s2720_s1 + $0xf0] sm:$0xff]  ;;  %v1582_v12 = vld [vmem:[%s2720_s1 + $0x158] sm:$0xff] }
 0xd81   :  { %v1928_v0 = vpop.permute.xlu0 %1927  ;;  %1471 = vmatpush.msra.mxu1 %v1450_v48  ;;  %v1946_v48 = vld [vmem:[%s2720_s1 + $0x100] ss:$0 sm:$0xff] }
 0xd82   :  { %v1929_v4 = vunpack.i.l.bf16 %v1928_v0  ;;  %v1930_v8 = vunpack.i.h.bf16 %v1928_v0  ;;  %v1586_v0 = vld [vmem:[%s2720_s1 + $0x178] sm:$0xff] }
 0xd83   :  { %1472 = vmatpush.msra.mxu1 %v1449_v18  ;;  %1593 = vmatpush.msrb.mxu2 %v1586_v0  ;;  %v1579_v18 = vld [vmem:[%s2720_s1 + $0x140] sm:$0xff] }
 0xd84   :  { %1286 = vmatpush.msra.mxu3 %v1929_v4 }
 0xd85   :  { %1473 = vmatpush.msra.mxu1 %v1448_v31  ;;  %1594 = vmatpush.msrb.mxu2 %v1585_v5 }
 0xd86   :  { %1287 = vmatpush.msra.mxu3 %v1930_v8 }
 0xd87   :  { %1853 = vmatmul.msk.f32.vlgmr.msra.gmra.mxu3 %vm183_vm3, %v1258_v43  ;;  %1474 = vmatpush.msra.mxu1 %v1447_v20  ;;  %v1584_v43 = vld [vmem:[%s2720_s1 + $0x168] sm:$0xff] }
 0xd88   :  { %1560 = vmatpush.msrb.mxu3 %v1539_v44  ;;  %1595 = vmatpush.msrb.mxu2 %v1584_v43  ;;  %v1669_v43 = vld [vmem:[%s2720_s1 + $0x1b0] sm:$0xff] }
 0xd8a   :  { %1561 = vmatpush.msrb.mxu3 %v1538_v57  ;;  %1596 = vmatpush.msrb.mxu2 %v1583_v10 }
 0xd8c   :  { %1562 = vmatpush.msrb.mxu3 %v1537_v59  ;;  %1597 = vmatpush.msrb.mxu2 %v1582_v12  ;;  %v2041_v59 = vld [vmem:[%s2719_s0] sm:$0xff] }
 0xd8e   :  { %1563 = vmatpush.msrb.mxu3 %v1536_v49 }
 0xd8f   :  { %1854 = vmatmul.msk.f32.gmra.mxu3 %vm183_vm3, %v1259_v13 }
 0xd91   :  { %v1167_v26 = vpop.f32.mrf.mxu0 }
 0xd92   :  { %1419 = vrot.lane.b32.xlu1 %v1167_v26, %s2056_s12  ;;  %v1581_v26 = vld [vmem:[%s2720_s1 + $0x150] sm:$0xff] }
 0xd93   :  { %1598 = vmatpush.msrb.mxu2 %v1581_v26 }
 0xd99   :  { %v1170_v16 = vpop.f32.mrf.mxu0 }
 0xd9a   :  { %1421 = vrot.lane.b32.xlu2 %v1170_v16, %s2056_s12 }
 0xdf2   :  { %v1411_v41 = vpop.f32.mrf.mxu0 }
 0xdf3   :  { %1435 = vrot.lane.b32.xlu1 %v1411_v41, %s2058_s14 }
 0xdf4   :  { %v1422_v7 = vpop.permute.xlu2 %1421 }
 0xdf5   :  { %v1442_v60 = vsel %vm149_vm2, %v2497_v23, %v1422_v7 }
 0xdfa   :  { %v1414_v58 = vpop.f32.mrf.mxu0 }
 0xdfb   :  { %1437 = vrot.lane.b32.xlu1 %v1414_v58, %s2058_s14  ;;  %v1580_v58 = vld [vmem:[%s2720_s1 + $0x148] sm:$0xff] }
 0xdfc   :  { %1599 = vmatpush.msrb.mxu2 %v1580_v58 }
 0xdfe   :  { %1600 = vmatpush.msrb.mxu2 %v1579_v18 }
 0xe04   :  { %v1420_v21 = vpop.permute.xlu1 %1419 }
 0xe05   :  { %v1441_v15 = vsel %vm149_vm2, %v2495_v2, %v1420_v21  ;;  %v1945_v2 = vld [vmem:[%s2720_s1 + $0xf8] ss:$0 sm:$0xff] }
 0xe0a   :  { %v1289_v17 = vpop.f32.mrf.mxu3 }
 0xe0b   :  { %1427 = vrot.lane.b32.xlu0 %v1289_v17, %s2057_s13 }
 0xe12   :  { %v1292_v30 = vpop.f32.mrf.mxu3 }
 0xe13   :  { %1429 = vrot.lane.b32.xlu0 %v1292_v30, %s2057_s13 }
 0xe65   :  { %v1436_v19 = vpop.permute.xlu1 %1435 }
 0xe6d   :  { %v1438_v28 = vpop.permute.xlu1 %1437 }
 0xe7d   :  { %v1428_v22 = vpop.permute.xlu0 %1427 }
 0xe7e   :  { %v1443_v24 = vsel %vm183_vm3, %v1441_v15, %v1428_v22  ;;  %v1578_v15 = vld [vmem:[%s2720_s1 + $0x138] sm:$0xff] }
 0xe7f   :  { %v1445_v25 = vsel %vm661_vm12, %v1443_v24, %v1436_v19  ;;  %v1947_v19 = vld [vmem:[%s2720_s1 + $0x108] ss:$0 sm:$0xff]  ;;  %1601 = vmatpush.msrb.mxu2 %v1578_v15 }
 0xe80   :  { %1861 = vmatmul.msk.f32.vlgmr.msra.gmra.mxu1 %vm105_vm0, %v1445_v25  ;;  %v1577_v25 = vld [vmem:[%s2720_s1 + $0x130] sm:$0xff] }
 0xe81   :  { %1602 = vmatpush.msrb.mxu2 %v1577_v25 }
 0xe85   :  { %v1430_v27 = vpop.permute.xlu0 %1429 }
 0xe86   :  { %v1444_v29 = vsel %vm183_vm3, %v1442_v60, %v1430_v27  ;;  %v1576_v27 = vld [vmem:[%s2720_s1 + $0x128] sm:$0xff] }
 0xe87   :  { %v1446_v32 = vsel %vm661_vm12, %v1444_v29, %v1438_v28  ;;  %1603 = vmatpush.msrb.mxu2 %v1576_v27 }
 0xe88   :  { %1862 = vmatmul.msk.f32.gmra.mxu1 %vm105_vm0, %v1446_v32 }
 0xefd   :  { %v1476_v33 = vpop.f32.mrf.mxu1 }
 0xefe   :  { %v1477_v35 = vadd.f32 %v1945_v2, %v1476_v33 }
 0xf00   :  { %v1482_v36 = vadd.f32 %v1477_v35, %v2421_v39  ;;  %v1575_v35 = vld [vmem:[%s2720_s1 + $0x120] sm:$0xff] }
 0xf01   :  { %1604 = vmatpush.msrb.mxu2 %v1575_v35  ;;  %v1952_v35 = vld [vmem:[%s2720_s1 + $0x1c8] ss:$0 sm:$0xff] }
 0xf02   :  { %v1486_v38 = vsel %vm105_vm0, %v1482_v36, 0.0 }
 0xf03   :  { %1487 = vadd.xlane.f32.xlu2 %v1486_v38  ;;  %v1573_v38 = vld [vmem:[%s2720_s1 + $0x110] sm:$0xff] }
 0xf05   :  { %v1479_v23 = vpop.f32.mrf.mxu1 }
 0xf06   :  { %v1480_v14 = vadd.f32 %v1945_v2, %v1479_v23  ;;  %v1948_v23 = vld [vmem:[%s2721_s2 + $0x98] ss:$0 sm:$0xff] }
 0xf08   :  { %v1483_v40 = vadd.f32 %v1480_v14, %v2425_v50 }
 0xf0a   :  { %v1489_v42 = vsel %vm105_vm0, %v1483_v40, 0.0 }
 0xf0b   :  { %1490 = vadd.xlane.f32.xlu0 %v1489_v42 }
 0xf76   :  { %v1488_v37 = vpop.xlane.xlu2 %1487 }
 0xf77   :  { %v1492_v45 = vmul.f32 %v1488_v37, %v2308_v56 }
 0xf79   :  { %v1494_v46 = vsub.f32 %v1482_v36, %v1492_v45  ;;  %v1574_v36 = vld [vmem:[%s2720_s1 + $0x118] sm:$0xff] }
 0xf7a   :  { %1605 = vmatpush.msrb.mxu2 %v1574_v36 }
 0xf7b   :  { %v1496_v47 = vmul.f32 %v1494_v46, %v1494_v46 }
 0xf7c   :  { %1606 = vmatpush.msrb.mxu2 %v1573_v38 }
 0xf7d   :  { %v1498_v51 = vsel %vm105_vm0, %v1496_v47, 0.0  ;;  %v1949_v47 = vld [vmem:[%s2720_s1 + $0x190] ss:$0 sm:$0xff] }
 0xf7e   :  { %1499 = vadd.xlane.f32.xlu1 %v1498_v51  ;;  %v1491_v52 = vpop.xlane.xlu0 %1490 }
 0xf7f   :  { %v1493_v39 = vmul.f32 %v1491_v52, %v2308_v56 }
 0xf81   :  { %v2588_v53 = vsub.f32 %v1483_v40, %v1493_v39 }
 0xf83   :  { %v1497_v54 = vmul.f32 %v2588_v53, %v2588_v53 }
 0xf85   :  { %v1501_v50 = vsel %vm105_vm0, %v1497_v54, 0.0 }
 0xf86   :  { %1502 = vadd.xlane.f32.xlu2 %v1501_v50 }
 0xff1   :  { %v1500_v34 = vpop.xlane.xlu1 %1499 }
 0xff2   :  { %v1504_v61 = vmul.f32 %v1500_v34, %v2308_v56 }
 0xff4   :  { %v1506_v62 = vadd.f32 1e-05, %v1504_v61 }
 0xff6   :  { %2027 = vrsqrt.f32 %v1506_v62  ;;  %vm1514_vm12 = vweird.f32 %v1506_v62 }
 0xff9   :  { %v1503_v3 = vpop.xlane.xlu2 %1502 }
 0xffa   :  { %v1505_v4 = vmul.f32 %v1503_v3, %v2308_v56 }
 0xffc   :  { %v2028_v6 = vpop.eup %2027  ;;  %v1507_v8 = vadd.f32 1e-05, %v1505_v4 }
 0xffd   :  { %v1509_v9 = vmul.f32 %v2028_v6, %v1506_v62  ;;  %vm1515_vm2 = vweird.f32 %v2028_v6 }
 0xffe   :  { %2029 = vrsqrt.f32 %v1507_v8  ;;  %vm1516_vm14 = vmor %vm1514_vm12, %vm1515_vm2  ;;  %vm1524_vm4 = vweird.f32 %v1507_v8  ;;  %vm1749_vm2 = vcmask 123904  }
 0xfff   :  { %v1510_v11 = vmul.f32 %v2028_v6, %v1509_v9  ;;  %v1668_v9 = vld [vmem:[%s2720_s1 + $0x1a8] sm:$0xff] }
0x1001   :  { %v1511_v13 = vmul.f32 0.5, %v1510_v11 }
0x1003   :  { %v1512_v16 = vsub.f32 1.5, %v1511_v13 }
0x1004   :  { %v2030_v41 = vpop.eup %2029 }
0x1005   :  { %v1513_v17 = vmul.f32 %v2028_v6, %v1512_v16  ;;  %v1519_v30 = vmul.f32 %v2030_v41, %v1507_v8  ;;  %vm1525_vm15 = vweird.f32 %v2030_v41  ;;  %v1670_v8 = vld [vmem:[%s2720_s1 + $0x1b8] sm:$0xff] }
0x1006   :  { %vm1526_vm5 = vmor %vm1524_vm4, %vm1525_vm15  ;;  %vm1798_vm4 = vcmask 392192  }
0x1007   :  { %v1517_v31 = vsel %vm1516_vm14, %v2028_v6, %v1513_v17  ;;  %v1520_v20 = vmul.f32 %v2030_v41, %v1519_v30  ;;  %v1671_v6 = vld [vmem:[%s2720_s1 + $0x1c0] sm:$0xff] }
0x1008   :  { %v1528_v21 = vmul.f32 %v1517_v31, %v1494_v46  ;;  %1692 = vmatpush.msra.mxu0 %v1671_v6 }
0x1009   :  { %v1521_v22 = vmul.f32 0.5, %v1520_v20 }
0x100a   :  { %v1531_v24 = vmul.f32 %v1946_v48, %v1528_v21  ;;  %1693 = vmatpush.msra.mxu0 %v1670_v8  ;;  %v1950_v21 = vld [vmem:[%s2720_s1 + $0x198] ss:$0 sm:$0xff] }
0x100b   :  { %v1522_v7 = vsub.f32 1.5, %v1521_v22  ;;  %v1951_v22 = vld [vmem:[%s2720_s1 + $0x1a0] ss:$0 sm:$0xff] }
0x100c   :  { %v1534_v60 = vadd.f32 %v1947_v19, %v1531_v24  ;;  %1694 = vmatpush.msra.mxu0 %v1669_v43 }
0x100d   :  { %v1523_v28 = vmul.f32 %v2030_v41, %v1522_v7 }
0x100e   :  { %1863 = vmatmul.msk.f32.vlgmr.msrb.gmra.mxu3 %vm105_vm0, %v1534_v60  ;;  %1695 = vmatpush.msra.mxu0 %v1668_v9 }
0x100f   :  { %v1527_v29 = vsel %vm1526_vm5, %v2030_v41, %v1523_v28 }
0x1010   :  { %v1529_v32 = vmul.f32 %v1527_v29, %v2588_v53 }
0x1012   :  { %v1532_v2 = vmul.f32 %v1946_v48, %v1529_v32 }
0x1014   :  { %v1535_v33 = vadd.f32 %v1947_v19, %v1532_v2 }
0x1016   :  { %1864 = vmatmul.msk.f32.gmra.mxu3 %vm105_vm0, %v1535_v33 }
0x1091   :  { %v1565_v14 = vpop.f32.mrf.mxu3 }
0x1092   :  { %v1566_v40 = vadd.f32 %v1948_v23, %v1565_v14 }
0x1094   :  { %v1571_v42 = vmax.f32 %v1566_v40, 0.0 }
0x1096   :  { %1607 = vmatmul.f32.vlgmr.msrb.gmra.mxu2 %v1571_v42 }
0x1099   :  { %v1568_v37 = vpop.f32.mrf.mxu3 }
0x109a   :  { %v1569_v45 = vadd.f32 %v1948_v23, %v1568_v37 }
0x109c   :  { %v1572_v46 = vmax.f32 %v1569_v45, 0.0 }
0x109e   :  { %1610 = vmatmul.f32.gmra.mxu2 %v1572_v46 }
0x1119   :  { %v1608_v51 = vpop.f32.mrf.mxu2 }
0x111a   :  { %v1609_v52 = vadd.f32 %v1949_v47, %v1608_v51 }
0x111c   :  { %v1614_v39 = vadd.f32 %v1609_v52, %v1534_v60 }
0x111e   :  { %v1618_v53 = vsel %vm105_vm0, %v1614_v39, 0.0 }
0x111f   :  { %1619 = vadd.xlane.f32.xlu0 %v1618_v53 }
0x1121   :  { %v1611_v54 = vpop.f32.mrf.mxu2 }
0x1122   :  { %v1612_v50 = vadd.f32 %v1949_v47, %v1611_v54 }
0x1124   :  { %v1615_v44 = vadd.f32 %v1612_v50, %v1535_v33 }
0x1126   :  { %v1621_v57 = vsel %vm105_vm0, %v1615_v44, 0.0 }
0x1127   :  { %1622 = vadd.xlane.f32.xlu1 %v1621_v57 }
0x1140   :  { %1703 = vrot.lane.b32.xlu1 %v2041_v59, %s2045_s28 }
0x1192   :  { %v1620_v49 = vpop.xlane.xlu0 %1619 }
0x1193   :  { %v1624_v34 = vmul.f32 %v1620_v49, %v2308_v56 }
0x1195   :  { %v1626_v61 = vsub.f32 %v1614_v39, %v1624_v34 }
0x1197   :  { %v1628_v62 = vmul.f32 %v1626_v61, %v1626_v61 }
0x1199   :  { %v1630_v63 = vsel %vm105_vm0, %v1628_v62, 0.0 }
0x119a   :  { %v1623_v55 = vpop.xlane.xlu1 %1622  ;;  %1631 = vadd.xlane.f32.xlu2 %v1630_v63 }
0x119b   :  { %v1625_v0 = vmul.f32 %v1623_v55, %v2308_v56 }
0x119d   :  { %v1627_v3 = vsub.f32 %v1615_v44, %v1625_v0 }
0x119f   :  { %v1629_v4 = vmul.f32 %v1627_v3, %v1627_v3 }
0x11a1   :  { %v1633_v5 = vsel %vm105_vm0, %v1629_v4, 0.0 }
0x11a2   :  { %1634 = vadd.xlane.f32.xlu0 %v1633_v5 }
0x11b2   :  { %v1704_v14 = vpop.permute.xlu1 %1703 }
0x120d   :  { %v1632_v10 = vpop.xlane.xlu2 %1631 }
0x120e   :  { %v1636_v11 = vmul.f32 %v1632_v10, %v2308_v56 }
0x1210   :  { %v1638_v12 = vadd.f32 1e-05, %v1636_v11 }
0x1212   :  { %2031 = vrsqrt.f32 %v1638_v12  ;;  %vm1646_vm7 = vweird.f32 %v1638_v12 }
0x1215   :  { %v1635_v13 = vpop.xlane.xlu0 %1634 }
0x1216   :  { %v1637_v26 = vmul.f32 %v1635_v13, %v2308_v56 }
0x1218   :  { %v2032_v16 = vpop.eup %2031  ;;  %v1639_v41 = vadd.f32 1e-05, %v1637_v26 }
0x1219   :  { %v1641_v58 = vmul.f32 %v2032_v16, %v1638_v12  ;;  %vm1647_vm6 = vweird.f32 %v2032_v16 }
0x121a   :  { %2033 = vrsqrt.f32 %v1639_v41  ;;  %vm1648_vm8 = vmor %vm1646_vm7, %vm1647_vm6  ;;  %vm1656_vm10 = vweird.f32 %v1639_v41 }
0x121b   :  { %v1642_v17 = vmul.f32 %v2032_v16, %v1641_v58 }
0x121d   :  { %v1643_v30 = vmul.f32 0.5, %v1642_v17 }
0x121f   :  { %v1644_v48 = vsub.f32 1.5, %v1643_v30 }
0x1220   :  { %v2034_v18 = vpop.eup %2033 }
0x1221   :  { %v1645_v31 = vmul.f32 %v2032_v16, %v1644_v48  ;;  %v1651_v20 = vmul.f32 %v2034_v18, %v1639_v41  ;;  %vm1657_vm9 = vweird.f32 %v2034_v18 }
0x1222   :  { %vm1658_vm11 = vmor %vm1656_vm10, %vm1657_vm9 }
0x1223   :  { %v1649_v19 = vsel %vm1648_vm8, %v2032_v16, %v1645_v31  ;;  %v1652_v15 = vmul.f32 %v2034_v18, %v1651_v20 }
0x1224   :  { %v1660_v56 = vmul.f32 %v1649_v19, %v1626_v61 }
0x1225   :  { %v1653_v24 = vmul.f32 0.5, %v1652_v15 }
0x1226   :  { %v1663_v25 = vmul.f32 %v1950_v21, %v1660_v56 }
0x1227   :  { %v1654_v7 = vsub.f32 1.5, %v1653_v24 }
0x1228   :  { %v1666_v60 = vadd.f32 %v1951_v22, %v1663_v25 }
0x1229   :  { %v1655_v27 = vmul.f32 %v2034_v18, %v1654_v7 }
0x122a   :  { %1865 = vmatmul.msk.f32.vlgmr.msra.gmra.mxu0 %vm105_vm0, %v1666_v60 }
0x122b   :  { %v1659_v28 = vsel %vm1658_vm11, %v2034_v18, %v1655_v27 }
0x122c   :  { %v1661_v29 = vmul.f32 %v1659_v28, %v1627_v3 }
0x122e   :  { %v1664_v32 = vmul.f32 %v1950_v21, %v1661_v29 }
0x1230   :  { %v1667_v2 = vadd.f32 %v1951_v22, %v1664_v32 }
0x1232   :  { %1866 = vmatmul.msk.f32.gmra.mxu0 %vm105_vm0, %v1667_v2 }
0x12a7   :  { %v1697_v33 = vpop.f32.mrf.mxu0 }
0x12a8   :  { %v1698_v23 = vadd.f32 %v1952_v35, %v1697_v33 }
0x12af   :  { %v1700_v36 = vpop.f32.mrf.mxu0 }
0x12b0   :  { %v1701_v38 = vadd.f32 %v1952_v35, %v1700_v36 }
0x12b2   :  { %1867 = vmatpush.xpose.msk.msrb.mxu1 %vm105_vm0, %v1701_v38  ;;  %1787 = vmatpush.msra.mxu3 %v1701_v38 }
0x12b4   :  { %1788 = vmatpush.msra.mxu3 %v1698_v23 }
0x12b6   :  { %1868 = vmatpush.xpose.msk.msrb.mxu1 %vm105_vm0, %v1698_v23 }
0x12b9   :  { %1869 = vmatmul.msk.f32.vlgmr.msrb.gmra.mxu1 %vm105_vm0, %v1704_v14 }
0x1336   :  { %v1730_v40 = vpop.f32.mrf.mxu1 }
0x1337   :  { %1734 = vrot.lane.b32.xlu2 %v1730_v40, %s2050_s6 }
0x1391   :  { %v1735_v42 = vpop.permute.xlu2 %1734 }
0x1392   :  { %v1737_v37 = vsel %vm17_vm1, -1e+20, %v1735_v42 }
0x1393   :  { %v1739_v45 = vsel %vm1738_vm13, %v1737_v37, -inf }
0x1394   :  { %1740 = vmax.xlane.f32.xlu0 %v1739_v45 }
0x1407   :  { %v1741_v46 = vpop.xlane.xlu0 %1740 }
0x1408   :  { %v1742_v47 = vsub.f32 %v1737_v37, %v1741_v46 }
0x140a   :  { %v1743_v51 = vmul.f32 1.442695, %v1742_v47 }
0x140c   :  { %2035 = vpow2.f32 %v1743_v51 }
0x1412   :  { %v2036_v52 = vpop.eup %2035 }
0x1413   :  { %1746 = vrot.lane.b32.xlu0 %v2036_v52, %s2054_s10 }
0x1485   :  { %v1747_v39 = vpop.permute.xlu0 %1746 }
0x1486   :  { %v1750_v53 = vsel %vm1749_vm2, %v1747_v39, 0.0 }
0x1487   :  { %1751 = vadd.xlane.f32.xlu1 %v1750_v53 }
0x14fa   :  { %v1752_v54 = vpop.xlane.xlu1 %1751 }
0x14fb   :  { %2037 = vrcp.f32 %v1752_v54  ;;  %v1764_v1 = vand.u32 2147483648, %v1752_v54  ;;  %v1762_v49 = vand.u32 2147483647, %v1752_v54  ;;  %vm1758_vm12 = vweird.f32 %v1752_v54 }
0x14fd   :  { %v1765_v61 = vor.u32 1.1754944e-38, %v1764_v1  ;;  %vm1763_vm15 = vcmp.eq.f32.partialorder %v1762_v49, 8.507059e+37 }
0x1501   :  { %v2038_v50 = vpop.eup %2037 }
0x1502   :  { %v1754_v44 = vmul.f32 %v2038_v50, %v1752_v54  ;;  %vm1759_vm1 = vweird.f32 %v2038_v50 }
0x1503   :  { %vm1760_vm14 = vmor %vm1758_vm12, %vm1759_vm1 }
0x1504   :  { %v1755_v57 = vsub.f32 1.0, %v1754_v44 }
0x1506   :  { %v1756_v59 = vmul.f32 %v2038_v50, %v1755_v57 }
0x1508   :  { %v1757_v34 = vadd.f32 %v2038_v50, %v1756_v59 }
0x150a   :  { %v1761_v62 = vsel %vm1760_vm14, %v2038_v50, %v1757_v34 }
0x150b   :  { %v1766_v63 = vsel %vm1763_vm15, %v1765_v61, %v1761_v62 }
0x150c   :  { %v1767_v55 = vmul.f32 %v2036_v52, %v1766_v63 }
0x150e   :  { %1794 = vrot.lane.b32.xlu0 %v1767_v55, %s2050_s6  ;;  %1769 = vrot.lane.b32.xlu2 %v1767_v55, %s2054_s10 }
0x1568   :  { %v1770_v0 = vpop.permute.xlu2 %1769 }
0x1569   :  { %1870 = vmatmul.msk.f32.vlgmr.msra.gmra.mxu3 %vm183_vm3, %v1770_v0 }
0x1580   :  { %v1795_v5 = vpop.permute.xlu0 %1794 }
0x15ec   :  { %v1790_v3 = vpop.f32.mrf.mxu3 }
0x15ed   :  { %2039 = vtanh.f32 %v1790_v3 }
0x15f3   :  { %v2040_v4 = vpop.eup %2039 }
0x15f4   :  { %v1797_v6 = vsel %vm105_vm0, %v2040_v4, %v1795_v5 }
0x15f5   :  { %v1799_v8 = vsel %vm1798_vm4, %v1797_v6, 0.0 }
0x15f6   :  { %1800 = vst [vmem:[%s2722_s3] sm:$0x3] %v1799_v8 }

</bundles_post_ra>
